<compile_context>
chip_gen: v7x
topology: tpu7x:2x2x1
jax: 0.10.0
libtpu: 0.0.40
codegen_flags: <defaults>
</compile_context>

<pallas_src>
import functools

import jax
import jax.numpy as jnp
from jax.experimental import pallas as pl
from jax.experimental.pallas import tpu as pltpu


def _attention_pooling_kernel(attn_ref, feat_ref, o_ref, *, norm):
    # attn_ref: (Bt, M, HW)  -- contraction dim HW on lanes
    # feat_ref: (Bt, HW, N)  -- channels N on the 128-lane axis (channels-last)
    # o_ref:    (Bt, M, N)   -- lane-dense along channels
    a = attn_ref[...]
    if norm == 1:
        a = a + 1e-8
    f = feat_ref[...]

    # Batched MXU matmul: (Bt, M, HW) x (Bt, HW, N) -> (Bt, M, N)
    fm = jnp.einsum(
        "bmk,bkn->bmn", a, f,
        preferred_element_type=jnp.float32,
        precision=jax.lax.Precision.HIGHEST,
    )

    if norm in (1, 3):
        w = jnp.sum(a, axis=-1, keepdims=True)        # (Bt, M, 1)
        if norm == 3:
            w = w + 1e-8
        fm = fm / w
    elif norm == 2:
        # F.normalize(p=2, dim=-1): x / max(||x||_2, eps), eps = 1e-12
        denom = jnp.sqrt(jnp.sum(fm * fm, axis=-1, keepdims=True))
        fm = fm / jnp.maximum(denom, 1e-12)

    o_ref[...] = fm.astype(o_ref.dtype)


def _pick_batch_tile(B, M, HW, N, itemsize, target=8, vmem_budget=24 << 20):
    """Largest divisor of B <= target whose double-buffered block fits the budget."""
    best = 1
    for bt in range(1, min(B, target) + 1):
        if B % bt:
            continue
        block_bytes = bt * (M * HW + HW * N + M * N) * itemsize
        if 2 * block_bytes <= vmem_budget:   # double-buffered in + out
            best = bt
    return best


def attention_pooling(features, attentions, norm=2):
    """Pallas TPU implementation of AttentionPooling.forward (4-D features path)."""
    if features.ndim != 4:
        # TODO(synk): 5-D features path (einsum 'imjk,imnjk->imn') not implemented as a kernel.
        raise NotImplementedError("only 4-D features are supported")
    B, N, H, W = features.shape
    Ba, M, AH, AW = attentions.shape
    assert Ba == B, "batch mismatch"
    if (AH, AW) != (H, W):
        # TODO(synk): bilinear F.interpolate(align_corners=True) resize of attentions
        # (only taken when attention and feature spatial sizes differ) is not implemented.
        raise NotImplementedError("attention/feature spatial sizes must match")

    HW = H * W
    # Channels-last feature slab (HBM-side reshape/transpose is layout plumbing, ~free).
    feat = jnp.transpose(features, (0, 2, 3, 1)).reshape(B, HW, N)   # (B, HW, N)
    attn = attentions.reshape(B, M, HW)                              # (B, M, HW)

    itemsize = jnp.dtype(features.dtype).itemsize
    bt = _pick_batch_tile(B, M, HW, N, itemsize)
    grid = (B // bt,)

    out = pl.pallas_call(
        functools.partial(_attention_pooling_kernel, norm=norm),
        grid=grid,
        in_specs=[
            pl.BlockSpec((bt, M, HW), lambda b: (b, 0, 0)),
            pl.BlockSpec((bt, HW, N), lambda b: (b, 0, 0)),
        ],
        out_specs=pl.BlockSpec((bt, M, N), lambda b: (b, 0, 0)),
        out_shape=jax.ShapeDtypeStruct((B, M, N), features.dtype),
        compiler_params=pltpu.CompilerParams(
            dimension_semantics=("parallel",),
            vmem_limit_bytes=32 * 1024 * 1024,
        ),
    )(attn, feat)
    return out


def _reference_attention_pooling(features, attentions, norm=2):
    """Pure-JAX reference mirroring the PyTorch forward (AH==H, AW==W path)."""
    attn = attentions
    if norm == 1:
        attn = attn + 1e-8
    fm = jnp.einsum("imjk,injk->imn", attn, features,
                    precision=jax.lax.Precision.HIGHEST)
    if norm == 1:
        w = jnp.sum(attn, axis=(2, 3))[..., None]
        fm = fm / w
    elif norm == 2:
        denom = jnp.sqrt(jnp.sum(fm * fm, axis=-1, keepdims=True))
        fm = fm / jnp.maximum(denom, 1e-12)
    elif norm == 3:
        w = jnp.sum(attn, axis=(2, 3))[..., None] + 1e-8
        fm = fm / w
    return fm


if __name__ == "__main__":
    key = jax.random.PRNGKey(0)
    kf, ka = jax.random.split(key)

    B, N, M, H, W = 2, 8, 4, 14, 14
    features = jax.random.normal(kf, (B, N, H, W), dtype=jnp.float32)
    # Attention maps are typically non-negative (post-activation); keep them positive
    # so the norm=1 / norm=3 division paths are well conditioned.
    attentions = jnp.abs(jax.random.normal(ka, (B, M, H, W), dtype=jnp.float32))

    for norm in (1, 2, 3):
        out = attention_pooling(features, attentions, norm=norm)
        out = jax.block_until_ready(out)
        ref = _reference_attention_pooling(features, attentions, norm=norm)
        assert out.shape == (B, M, N), out.shape
        assert jnp.allclose(out, ref, atol=1e-5, rtol=1e-5), f"mismatch for norm={norm}"

    print("KERNEL_OK")
</pallas_src>

<mosaic_0001>
module attributes {stable_mosaic.version = 11 : i64} {
  func.func @_attention_pooling_kernel(%arg0: i32, %arg1: memref<2x4x196xf32, #tpu.memory_space<vmem>>, %arg2: memref<2x196x8xf32, #tpu.memory_space<vmem>>, %arg3: memref<2x4x8xf32, #tpu.memory_space<vmem>>) attributes {dimension_semantics = [#tpu.dimension_semantics<parallel>], iteration_bounds = array<i64: 1>, scalar_prefetch = 0 : i64, scratch_operands = 0 : i64, tpu.core_type = #tpu.core_type<tc>, window_params = [{transform_indices = @transform_0, window_bounds = array<i64: 2, 4, 196>}, {transform_indices = @transform_1, window_bounds = array<i64: 2, 196, 8>}, {transform_indices = @transform_2, window_bounds = array<i64: 2, 4, 8>}]} {
    %c0 = arith.constant 0 : index
    %c0_0 = arith.constant 0 : index
    %c0_1 = arith.constant 0 : index
    %0 = vector.load %arg1[%c0, %c0_0, %c0_1] : memref<2x4x196xf32, #tpu.memory_space<vmem>>, vector<2x4x196xf32>
    %cst = arith.constant 9.99999993E-9 : f32
    %1 = vector.broadcast %cst : f32 to vector<2x4x196xf32>
    %2 = arith.addf %0, %1 : vector<2x4x196xf32>
    %c0_2 = arith.constant 0 : index
    %c0_3 = arith.constant 0 : index
    %c0_4 = arith.constant 0 : index
    %3 = vector.load %arg2[%c0_2, %c0_3, %c0_4] : memref<2x196x8xf32, #tpu.memory_space<vmem>>, vector<2x196x8xf32>
    "tpu.trace_start"() <{level = 10 : i32, message = "bmk,bkn->bmn"}> : () -> ()
    %cst_5 = arith.constant dense<0.000000e+00> : vector<2x4x8xf32>
    %4 = tpu.matmul %2, %3, %cst_5 {dimension_numbers = #tpu.dot_dimension_numbers<[2], [1], [1], [2], [0, 0, 0, 1, 1, 2], [0], [0]>, precision = #tpu.contract_precision<fp32>} : vector<2x4x196xf32>, vector<2x196x8xf32>, vector<2x4x8xf32> -> vector<2x4x8xf32>
    "tpu.trace_stop"() : () -> ()
    %cst_6 = arith.constant dense<0.000000e+00> : vector<2x4xf32>
    %5 = vector.multi_reduction <add>, %2, %cst_6 [2] : vector<2x4x196xf32> to vector<2x4xf32>
    %6 = vector.shape_cast %5 : vector<2x4xf32> to vector<2x4x1xf32>
    %7 = vector.broadcast %6 : vector<2x4x1xf32> to vector<2x4x8xf32>
    %8 = arith.divf %4, %7 : vector<2x4x8xf32>
    %c0_7 = arith.constant 0 : index
    %c0_8 = arith.constant 0 : index
    %c0_9 = arith.constant 0 : index
    %9 = vector.load %arg3[%c0_7, %c0_8, %c0_9] : memref<2x4x8xf32, #tpu.memory_space<vmem>>, vector<2x4x8xf32>
    tpu.vector_store %arg3[%c0_7, %c0_8, %c0_9], %8 {strides = array<i32>} : memref<2x4x8xf32, #tpu.memory_space<vmem>>, vector<2x4x8xf32>,
    return
  }
  func.func @transform_0(%arg0: i32) -> (i32, i32, i32) {
    %c0_i32 = arith.constant 0 : i32
    %c0_i32_0 = arith.constant 0 : i32
    %c0_i32_1 = arith.constant 0 : i32
    return %arg0, %c0_i32, %c0_i32_0 : i32, i32, i32
  }
  func.func @transform_1(%arg0: i32) -> (i32, i32, i32) {
    %c0_i32 = arith.constant 0 : i32
    %c0_i32_0 = arith.constant 0 : i32
    %c0_i32_1 = arith.constant 0 : i32
    return %arg0, %c0_i32, %c0_i32_0 : i32, i32, i32
  }
  func.func @transform_2(%arg0: i32) -> (i32, i32, i32) {
    %c0_i32 = arith.constant 0 : i32
    %c0_i32_0 = arith.constant 0 : i32
    %c0_i32_1 = arith.constant 0 : i32
    return %arg0, %c0_i32, %c0_i32_0 : i32, i32, i32
  }
}

</mosaic_0001>

<bundles_post_ra>
// kernel: tpu_custom_call.1
= control target key start
LH: loop header
LB: loop body
LE: loop exit
PB: predicated region body
PF: predicated region fallthrough
CT: control target
= control target key end

     0   :  { %v3514_v3 = vmov 0.0|0.0   ;;  %s3499_s0 = inlined_call_operand.vmem [shape: f32[2,4,196], index: 0, kind: input, shape index: {}]   ;;  %s3500_s1 = inlined_call_operand.vmem [shape: f32[2,196,8], index: 1, kind: input, shape index: {}]   ;;  %s3501_s2 = inlined_call_operand.hbm [shape: f32[2,4,8], index: 2, kind: output, shape index: {}]  }
   0x1   :  { %v2168_v0 = vld [vmem:[%s3500_s1] sm:$0xff]  ;;  %v2173_v1 = vld [vmem:[%s3500_s1 + $0x8] sm:$0xff]  ;;  %1660 = vmatprep.subr.bf16.mxu0 %v3514_v3  ;;  %1876 = vmatprep.subr.bf16.mxu1 %v3514_v3  ;;  %v2187_v6 = vld [vmem:[%s3500_s1 + $0xd0] sm:$0xff] }
   0x2   :  { %v2178_v2 = vld [vmem:[%s3500_s1 + $0xc8] sm:$0xff]  ;;  %v76_v4 = vand.u32 4294901760, %v2168_v0  ;;  %v79_v5 = vand.u32 4294901760, %v2173_v1  ;;  %v2193_v8 = vld [vmem:[%s3500_s1 + $0x10] sm:$0xff]  ;;  %v2198_v9 = vld [vmem:[%s3500_s1 + $0x18] sm:$0xff]  ;;  %v857_v10 = vand.u32 4294901760, %v2187_v6 }
   0x3   :  { %v854_v7 = vand.u32 4294901760, %v2178_v2  ;;  %v82_v11 = vand.u32 4294901760, %v2193_v8  ;;  %v85_v12 = vand.u32 4294901760, %v2198_v9  ;;  %v2206_v13 = vld [vmem:[%s3500_s1 + $0xd8] sm:$0xff]  ;;  %v2211_v14 = vld [vmem:[%s3500_s1 + $0xe0] sm:$0xff]  ;;  %v2225_v17 = vld [vmem:[%s3500_s1 + $0x28] sm:$0xff] }
   0x4   :  { %v2216_v15 = vld [vmem:[%s3500_s1 + $0x20] sm:$0xff]  ;;  %v2220_v16 = vpack.c.bf16 %v79_v5, %v76_v4  ;;  %v2230_v18 = vld [vmem:[%s3500_s1 + $0xe8] sm:$0xff]  ;;  %v2235_v19 = vld [vmem:[%s3500_s1 + $0xf0] sm:$0xff]  ;;  %v860_v22 = vand.u32 4294901760, %v2206_v13  ;;  %v863_v23 = vand.u32 4294901760, %v2211_v14  ;;  %v91_v25 = vand.u32 4294901760, %v2225_v17 }
   0x5   :  { %v2241_v20 = vpack.c.bf16 %v857_v10, %v854_v7  ;;  %v2248_v21 = vpack.c.bf16 %v85_v12, %v82_v11  ;;  %v88_v24 = vand.u32 4294901760, %v2216_v15  ;;  %v866_v26 = vand.u32 4294901760, %v2230_v18  ;;  %v2261_v28 = vld [vmem:[%s3500_s1 + $0x30] sm:$0xff]  ;;  %v2266_v29 = vld [vmem:[%s3500_s1 + $0x38] sm:$0xff]  ;;  %v2283_v32 = vld [vmem:[%s3500_s1 + $0x100] sm:$0xff] }
   0x6   :  { %3638 = vst [vmem:[#allocation5_spill] sm:$0xff] %v2220_v16  ;;  %1662 = vmatpush1.bf16.msra.mxu0 %v2220_v16  ;;  %v869_v27 = vand.u32 4294901760, %v2235_v19  ;;  %v2273_v30 = vpack.c.bf16 %v863_v23, %v860_v22  ;;  %v2278_v31 = vld [vmem:[%s3500_s1 + $0xf8] sm:$0xff]  ;;  %v94_v34 = vand.u32 4294901760, %v2261_v28  ;;  %v97_v35 = vand.u32 4294901760, %v2266_v29  ;;  %v2303_v39 = vld [vmem:[%s3500_s1 + $0x40] sm:$0xff] }
   0x7   :  { %3639 = vst [vmem:[#allocation6_spill] sm:$0xff] %v2241_v20  ;;  %3640 = vst [vmem:[#allocation7_spill] sm:$0xff] %v2248_v21  ;;  %1878 = vmatpush1.bf16.msra.mxu1 %v2241_v20  ;;  %1663 = vmatprep.subr.bf16.mxu0 %v3514_v3  ;;  %v2288_v33 = vpack.c.bf16 %v91_v25, %v88_v24  ;;  %v872_v37 = vand.u32 4294901760, %v2278_v31  ;;  %v875_v38 = vand.u32 4294901760, %v2283_v32  ;;  %v2308_v40 = vld [vmem:[%s3500_s1 + $0x48] sm:$0xff]  ;;  %v2319_v42 = vld [vmem:[%s3500_s1 + $0x110] sm:$0xff] }
   0x8   :  { %1879 = vmatprep.subr.bf16.mxu1 %v3514_v3  ;;  %3641 = vst [vmem:[#allocation8_spill] sm:$0xff] %v2273_v30  ;;  %v2296_v36 = vpack.c.bf16 %v869_v27, %v866_v26  ;;  %v2314_v41 = vld [vmem:[%s3500_s1 + $0x108] sm:$0xff]  ;;  %v2326_v43 = vpack.c.bf16 %v97_v35, %v94_v34  ;;  %v100_v44 = vand.u32 4294901760, %v2303_v39  ;;  %v103_v45 = vand.u32 4294901760, %v2308_v40  ;;  %v26_v49 = vld [vmem:[%s3500_s1 + $0x50] sm:$0xff]  ;;  %v27_v50 = vld [vmem:[%s3500_s1 + $0x58] sm:$0xff] }
   0x9   :  { %3642 = vst [vmem:[#allocation9_spill] sm:$0xff] %v2288_v33  ;;  %v2332_v46 = vpack.c.bf16 %v875_v38, %v872_v37  ;;  %v878_v47 = vand.u32 4294901760, %v2314_v41  ;;  %v881_v48 = vand.u32 4294901760, %v2319_v42  ;;  %v2346_v51 = vld [vmem:[%s3500_s1 + $0x118] sm:$0xff]  ;;  %v2351_v52 = vld [vmem:[%s3500_s1 + $0x120] sm:$0xff]  ;;  %v2354_v53 = vsub.f32 %v2168_v0, %v76_v4  ;;  %v29_v62 = vld [vmem:[%s3500_s1 + $0x68] sm:$0xff] }
   0xa   :  { %1665 = vmatpush1.bf16.msra.mxu0 %v2248_v21  ;;  %3643 = vst [vmem:[#allocation10_spill] sm:$0xff] %v2296_v36  ;;  %3644 = vst [vmem:[#allocation11_spill] sm:$0xff] %v2326_v43  ;;  %v2357_v54 = vpack.c.bf16 %v103_v45, %v100_v44  ;;  %v106_v55 = vand.u32 4294901760, %v26_v49  ;;  %v109_v56 = vand.u32 4294901760, %v27_v50  ;;  %v2362_v57 = vsub.f32 %v2173_v1, %v79_v5  ;;  %v28_v61 = vld [vmem:[%s3500_s1 + $0x60] sm:$0xff] }
   0xb   :  { %1881 = vmatpush1.bf16.msra.mxu1 %v2273_v30  ;;  %1666 = vmatprep.subr.bf16.mxu0 %v3514_v3  ;;  %3645 = vst [vmem:[#allocation12_spill] sm:$0xff] %v2332_v46  ;;  %3646 = vst [vmem:[#allocation13_spill] sm:$0xff] %v2354_v53  ;;  %v2366_v58 = vpack.c.bf16 %v881_v48, %v878_v47  ;;  %v884_v59 = vand.u32 4294901760, %v2346_v51  ;;  %v887_v60 = vand.u32 4294901760, %v2351_v52 }
   0xc   :  { %1882 = vmatprep.subr.bf16.mxu1 %v3514_v3  ;;  %3647 = vst [vmem:[#allocation14_spill] sm:$0xff] %v2357_v54  ;;  %3648 = vst [vmem:[#allocation15_spill] sm:$0xff] %v2362_v57 }
   0xd   :  { %3649 = vst [vmem:[#allocation16_spill] sm:$0xff] %v2366_v58 }
   0xe   :  { %1668 = vmatpush1.bf16.msra.mxu0 %v2288_v33 }
   0xf   :  { %1884 = vmatpush1.bf16.msra.mxu1 %v2296_v36  ;;  %1669 = vmatprep.subr.bf16.mxu0 %v3514_v3 }
  0x10   :  { %1885 = vmatprep.subr.bf16.mxu1 %v3514_v3 }
  0x12   :  { %1671 = vmatpush1.bf16.msra.mxu0 %v2326_v43 }
  0x13   :  { %1887 = vmatpush1.bf16.msra.mxu1 %v2332_v46  ;;  %1672 = vmatprep.subr.bf16.mxu0 %v3514_v3 }
  0x14   :  { %7 = vsyncpa [#allocation3], 0  ;;  %v2379_v63 = vsub.f32 %v2178_v2, %v854_v7  ;;  %v2384_v0 = vsub.f32 %v2187_v6, %v857_v10  ;;  %v2389_v1 = vsub.f32 %v2193_v8, %v82_v11  ;;  %v2394_v4 = vsub.f32 %v2198_v9, %v85_v12  ;;  %1888 = vmatprep.subr.bf16.mxu1 %v3514_v3  ;;  %v53_v2 = vld [vmem:[%s3500_s1 + $0x128] sm:$0xff]  ;;  %v54_v5 = vld [vmem:[%s3500_s1 + $0x130] sm:$0xff] }
  0x15   :  { %v2406_v6 = vsub.f32 %v2206_v13, %v860_v22  ;;  %v2411_v7 = vsub.f32 %v2211_v14, %v863_v23  ;;  %v2416_v8 = vsub.f32 %v2216_v15, %v88_v24  ;;  %v2419_v9 = vsub.f32 %v2225_v17, %v91_v25  ;;  %v30_v22 = vld [vmem:[%s3500_s1 + $0x70] sm:$0xff]  ;;  %v31_v23 = vld [vmem:[%s3500_s1 + $0x78] sm:$0xff]  ;;  %v2589_v46 = vld [vmem:[%s3500_s1 + $0x168] sm:$0xff] }
  0x16   :  { %3650 = vst [vmem:[#allocation17_spill] sm:$0xff] %v2389_v1  ;;  %3651 = vst [vmem:[#allocation18_spill] sm:$0xff] %v2394_v4  ;;  %v2422_v10 = vsub.f32 %v2230_v18, %v866_v26  ;;  %1674 = vmatpush1.bf16.msra.mxu0 %v2357_v54  ;;  %v2425_v11 = vpack.c.bf16 %v109_v56, %v106_v55  ;;  %v112_v12 = vand.u32 4294901760, %v28_v61  ;;  %v115_v13 = vand.u32 4294901760, %v29_v62  ;;  %v2656_v33 = vld [vmem:[%s3500_s1 + $0x180] sm:$0xff] }
  0x17   :  { %3652 = vst [vmem:[#allocation19_spill] sm:$0xff] %v2406_v6  ;;  %3653 = vst [vmem:[#allocation20_spill] sm:$0xff] %v2411_v7  ;;  %v2430_v14 = vsub.f32 %v2235_v19, %v869_v27  ;;  %1890 = vmatpush1.bf16.msra.mxu1 %v2366_v58  ;;  %1675 = vmatprep.subr.bf16.mxu0 %v3514_v3  ;;  %v2434_v15 = vpack.c.bf16 %v887_v60, %v884_v59  ;;  %v890_v17 = vand.u32 4294901760, %v53_v2  ;;  %v55_v27 = vld [vmem:[%s3500_s1 + $0x138] sm:$0xff]  ;;  %vm71_vm0 = vcmask 1043456  }
  0x18   :  { %3654 = vst [vmem:[#allocation21_spill] sm:$0xff] %v2425_v11  ;;  %v893_v18 = vand.u32 4294901760, %v54_v5  ;;  %v2445_v19 = vsub.f32 %v2261_v28, %v94_v34  ;;  %v2450_v24 = vsub.f32 %v2266_v29, %v97_v35  ;;  %v2453_v25 = vsub.f32 %v2278_v31, %v872_v37  ;;  %1891 = vmatprep.subr.bf16.mxu1 %v3514_v3  ;;  %v56_v28 = vld [vmem:[%s3500_s1 + $0x140] sm:$0xff]  ;;  %v2485_v37 = vld [vmem:[%s3500_s1 + $0x88] sm:$0xff] }
  0x19   :  { %3655 = vst [vmem:[#allocation22_spill] sm:$0xff] %v2434_v15  ;;  %v2456_v26 = vsub.f32 %v2283_v32, %v875_v38  ;;  %v2466_v34 = vsub.f32 %v2303_v39, %v100_v44  ;;  %v2469_v29 = vsub.f32 %v2308_v40, %v103_v45  ;;  %v2472_v31 = vsub.f32 %v2314_v41, %v878_v47  ;;  %v2480_v35 = vld [vmem:[%s3500_s1 + $0x80] sm:$0xff]  ;;  %v2500_v44 = vld [vmem:[%s3500_s1 + $0x150] sm:$0xff] }
  0x1a   :  { %v2475_v32 = vsub.f32 %v2319_v42, %v881_v48  ;;  %1677 = vmatpush1.bf16.msra.mxu0 %v2425_v11  ;;  %v2488_v38 = vsub.f32 %v26_v49, %v106_v55  ;;  %v2490_v39 = vpack.c.bf16 %v115_v13, %v112_v12  ;;  %v118_v40 = vand.u32 4294901760, %v30_v22  ;;  %v2495_v42 = vld [vmem:[%s3500_s1 + $0x148] sm:$0xff] }
  0x1b   :  { %v121_v41 = vand.u32 4294901760, %v31_v23  ;;  %v2502_v45 = vsub.f32 %v27_v50, %v109_v56  ;;  %1893 = vmatpush1.bf16.msra.mxu1 %v2434_v15  ;;  %1678 = vmatprep.subr.bf16.mxu0 %v3514_v3  ;;  %v2506_v47 = vpack.c.bf16 %v893_v18, %v890_v17  ;;  %v896_v48 = vand.u32 4294901760, %v55_v27 }
  0x1c   :  { %3656 = vst [vmem:[#allocation23_spill] sm:$0xff] %v2490_v39  ;;  %v899_v49 = vand.u32 4294901760, %v56_v28  ;;  %v2509_v55 = vsub.f32 %v2346_v51, %v884_v59  ;;  %v2512_v11 = vsub.f32 %v2351_v52, %v887_v60  ;;  %1894 = vmatprep.subr.bf16.mxu1 %v3514_v3  ;;  %v3513_v58 = vand.u32 4294901760, %v2480_v35  ;;  %v2526_v51 = vld [vmem:[%s3500_s1 + $0x90] sm:$0xff]  ;;  %v12_v52 = vld [vmem:[%s3499_s0] sm:$0xff] }
  0x1d   :  { %3657 = vst [vmem:[#allocation24_spill] sm:$0xff] %v2506_v47  ;;  %v3512_v50 = vand.u32 4294901760, %v2485_v37  ;;  %v2517_v56 = vsub.f32 %v28_v61, %v112_v12  ;;  %v2519_v15 = vsub.f32 %v29_v62, %v115_v13  ;;  %v3518_v54 = vand.u32 4294901760, %v2495_v42  ;;  %v2543_v12 = vld [vmem:[%s3500_s1 + $0x98] sm:$0xff] }
  0x1e   :  { %1680 = vmatpush1.bf16.msra.mxu0 %v2490_v39  ;;  %v2532_v59 = vsub.f32 %v53_v2, %v890_v17  ;;  %v2534_v60 = vsub.f32 %v54_v5, %v893_v18  ;;  %v2536_v61 = vpack.c.bf16 %v121_v41, %v118_v40  ;;  %v2538_v62 = vsub.f32 %v30_v22, %v118_v40  ;;  %v2548_v13 = vld [vmem:[%s3500_s1 + $0x158] sm:$0xff]  ;;  %v2561_v18 = vld [vmem:[%s3500_s1 + $0x160] sm:$0xff]  ;;  %v13_v40 = vld [vmem:[%s3499_s0 + $0x8] sm:$0xff] }
  0x1f   :  { %1896 = vmatpush1.bf16.msra.mxu1 %v2506_v47  ;;  %1681 = vmatprep.subr.bf16.mxu0 %v3514_v3  ;;  %v2552_v2 = vsub.f32 %v31_v23, %v121_v41  ;;  %v2554_v5 = vpack.c.bf16 %v899_v49, %v896_v48  ;;  %v2556_v17 = vsub.f32 %v55_v27, %v896_v48  ;;  %v2566_v22 = vld [vmem:[%s3500_s1 + $0xa0] sm:$0xff]  ;;  %v2584_v48 = vld [vmem:[%s3500_s1 + $0xa8] sm:$0xff]  ;;  %v2609_v47 = vld [vmem:[%s3500_s1 + $0xb0] sm:$0xff]  ;;  %vm68_vm1 = vcmask 556032  }
  0x20   :  { %3658 = vst [vmem:[#allocation25_spill] sm:$0xff] %v2532_v59  ;;  %3659 = vst [vmem:[#allocation26_spill] sm:$0xff] %v2534_v60  ;;  %1897 = vmatprep.subr.bf16.mxu1 %v3514_v3  ;;  %v2572_v23 = vsub.f32 %v56_v28, %v899_v49  ;;  %v2578_v27 = vpack.c.bf16 %v3512_v50, %v3513_v58  ;;  %v2594_v28 = vld [vmem:[%s3500_s1 + $0x170] sm:$0xff]  ;;  %v2596_v49 = vadd.f32 1e-08, %v12_v52  ;;  %v3669_v50 = vand.u32 4294901760, %v2500_v44 }
  0x21   :  { %3660 = vst [vmem:[#allocation27_spill] sm:$0xff] %v2536_v61  ;;  %3661 = vst [vmem:[#allocation28_spill] sm:$0xff] %v2552_v2  ;;  %v2614_v52 = vld [vmem:[%s3500_s1 + $0xb8] sm:$0xff]  ;;  %v2622_v3 = vadd.f32 1e-08, %v13_v40  ;;  %v3676_v39 = vmov 0.0|0.0  }
  0x22   :  { %3662 = vst [vmem:[#allocation29_spill] sm:$0xff] %v2554_v5  ;;  %3663 = vst [vmem:[#allocation30_spill] sm:$0xff] %v2556_v17  ;;  %v2602_v58 = vpack.c.bf16 %v3669_v50, %v3518_v54  ;;  %1683 = vmatpush1.bf16.msra.mxu0 %v2536_v61  ;;  %v2620_v54 = vcombine.high %v2596_v49, %v2596_v49  ;;  %v2625_v41 = vand.u32 4294901760, %v2596_v49  ;;  %v3678_v43 = vand.u32 4294901760, %v2526_v51  ;;  %v2651_v50 = vld [vmem:[%s3500_s1 + $0x178] sm:$0xff] }
  0x23   :  { %3664 = vst [vmem:[#allocation31_spill] sm:$0xff] %v2572_v23  ;;  %3665 = vst [vmem:[#allocation32_spill] sm:$0xff] %v2578_v27  ;;  %1899 = vmatpush1.bf16.msra.mxu1 %v2554_v5  ;;  %1684 = vmatprep.subr.bf16.mxu0 %v3676_v39  ;;  %v2640_v5 = vcombine.high %v2622_v3, %v2622_v3  ;;  %v3679_v36 = vand.u32 4294901760, %v2543_v12  ;;  %v2662_v21 = vand.u32 4294901760, %v2622_v3  ;;  %v3689_v17 = vand.u32 4294901760, %v2584_v48 }
  0x24   :  { %3666 = vst [vmem:[#allocation33_spill] sm:$0xff] %v2584_v48  ;;  %3667 = vst [vmem:[#allocation34_spill] sm:$0xff] %v2594_v28  ;;  %1900 = vmatprep.subr.bf16.mxu1 %v3676_v39  ;;  %v69_v30 = vsel %vm68_vm1, %v2620_v54, 0  ;;  %v2675_v23 = vsub.f32 %v2596_v49, %v2625_v41  ;;  %vm1627_vm2 = vcmask 551936   ;;  %vm1641_vm3 = vcmask 60416  }
  0x25   :  { %3668 = vst [vmem:[#allocation35_spill] sm:$0xff] %v2596_v49  ;;  %3670 = vst [vmem:[#allocation36_spill] sm:$0xff] %v2602_v58  ;;  %v2646_v61 = vpack.c.bf16 %v3679_v36, %v3678_v43  ;;  %v2658_v40 = vand.u32 4294901760, %v69_v30  ;;  %v3684_v36 = vand.u32 4294901760, %v2548_v13  ;;  %v3685_v43 = vand.u32 4294901760, %v2561_v18 }
  0x26   :  { %3671 = vst [vmem:[#allocation37_spill] sm:$0xff] %v2609_v47  ;;  %3672 = vst [vmem:[#allocation38_spill] sm:$0xff] %v2614_v52  ;;  %1686 = vmatpush1.bf16.msra.mxu0 %v2578_v27  ;;  %v848_v16 = vsel %vm68_vm1, %v2640_v5, 0  ;;  %v3688_v27 = vand.u32 4294901760, %v2566_v22 }
  0x27   :  { %3673 = vst [vmem:[#allocation39_spill] sm:$0xff] %v2620_v54  ;;  %3674 = vst [vmem:[#allocation40_spill] sm:$0xff] %v2622_v3  ;;  %v2669_v20 = vpack.c.bf16 %v3685_v43, %v3684_v36  ;;  %1902 = vmatpush1.bf16.msra.mxu1 %v2602_v58  ;;  %1687 = vmatprep.subr.bf16.mxu0 %v3676_v39  ;;  %v2687_v36 = vsub.f32 %v69_v30, %v2658_v40  ;;  %v2689_v43 = vand.u32 4294901760, %v848_v16 }
  0x28   :  { %3675 = vst [vmem:[#allocation41_spill] sm:$0xff] %v2625_v41  ;;  %3677 = vst [vmem:[#allocation42_spill] sm:$0xff] %v2640_v5  ;;  %v2684_v2 = vpack.c.bf16 %v3689_v17, %v3688_v27  ;;  %v2693_v5 = vsub.f32 %v2622_v3, %v2662_v21  ;;  %1903 = vmatprep.subr.bf16.mxu1 %v3676_v39  ;;  %v3694_v54 = vand.u32 4294901760, %v2589_v46  ;;  %v3695_v58 = vand.u32 4294901760, %v2594_v28  ;;  %v40_v3 = vld [vmem:[%s3500_s1 + $0xc0] sm:$0xf] }
  0x29   :  { %3680 = vst [vmem:[#allocation43_spill] sm:$0xff] %v2646_v61  ;;  %3681 = vst [vmem:[#allocation44_spill] sm:$0xff] %v2651_v50  ;;  %v3697_v17 = vand.u32 4294901760, %v2609_v47  ;;  %v3698_v27 = vand.u32 4294901760, %v2614_v52  ;;  %v3702_v52 = vand.u32 4294901760, %v2362_v57  ;;  %v3705_v41 = vand.u32 4294901760, %v2656_v33 }
  0x2a   :  { %3682 = vst [vmem:[#allocation45_spill] sm:$0xff] %v2658_v40  ;;  %3683 = vst [vmem:[#allocation46_spill] sm:$0xff] %v2662_v21  ;;  %v2700_v49 = vpack.c.bf16 %v3695_v58, %v3694_v54  ;;  %v65_v21 = vld [vmem:[%s3500_s1 + $0x188] sm:$0xf]  ;;  %v2718_v58 = vsub.f32 %v848_v16, %v2689_v43  ;;  %1689 = vmatpush1.bf16.msra.mxu0 %v2646_v61  ;;  %v3703_v16 = vand.u32 4294901760, %v2687_v36  ;;  %v3709_v28 = vand.u32 4294901760, %v2675_v23 }
  0x2b   :  { %3686 = vst [vmem:[#allocation47_spill] sm:$0xff] %v2669_v20  ;;  %3687 = vst [vmem:[#allocation48_spill] sm:$0xff] %v2675_v23  ;;  %v2706_v30 = vpack.c.bf16 %v3698_v27, %v3697_v17  ;;  %v3701_v17 = vand.u32 4294901760, %v2354_v53  ;;  %v191_v47 = vsub.f32 %v2362_v57, %v3702_v52  ;;  %1905 = vmatpush1.bf16.msra.mxu1 %v2669_v20  ;;  %1690 = vmatprep.subr.bf16.mxu0 %v3676_v39  ;;  %s2147_s1 = smov [#allocation2]  }
  0x2c   :  { %3690 = vst [vmem:[#allocation49_spill] sm:$0xff] %v2684_v2  ;;  %3691 = vst [vmem:[#allocation50_spill] sm:$0xff] %v2687_v36  ;;  %1906 = vmatprep.subr.bf16.mxu1 %v3676_v39  ;;  %v2741_v52 = vsel %vm71_vm0, %v40_v3, 0  ;;  %v2744_v54 = vsel %vm71_vm0, %v65_v21, 0  ;;  %v3707_v61 = vand.u32 4294901760, %v2718_v58  ;;  %v3708_v3 = vand.u32 4294901760, %v2379_v63 }
  0x2d   :  { %3692 = vst [vmem:[#allocation51_spill] sm:$0xff] %v2689_v43  ;;  %3693 = vst [vmem:[#allocation52_spill] sm:$0xff] %v2693_v5  ;;  %v184_v27 = vsub.f32 %v2354_v53, %v3701_v17  ;;  %v167_v17 = vsub.f32 %v2687_v36, %v3703_v16  ;;  %v3704_v16 = vand.u32 4294901760, %v2651_v50  ;;  %v173_v20 = vsub.f32 %v2675_v23, %v3709_v28  ;;  %s1649_s28 = sshll.u32 %s2147_s1, 4  ;;  %s1650_s28 = int_to_ptr.vmem [resolvable:$true] %s1649_s28 }
  0x2e   :  { %3696 = vst [vmem:[#allocation53_spill] sm:$0xff] %v2700_v49  ;;  %3699 = vst [vmem:[#allocation54_spill] sm:$0xff] %v2706_v30  ;;  %v945_v57 = vsub.f32 %v2718_v58, %v3707_v61  ;;  %v962_v21 = vsub.f32 %v2379_v63, %v3708_v3  ;;  %1692 = vmatpush1.bf16.msra.mxu0 %v2684_v2  ;;  %v192_v50 = vand.u32 4294901760, %v191_v47  ;;  %v3712_v2 = vand.u32 4294901760, %v2389_v1  ;;  %s2121_s29 = scalar_lea.vmem %s1650_s28, 128  ;;  %p2126_p1 = scmp.lt.s32.totalorder %s1650_s28, %s1650_s28 }
  0x2f   :  { %3700 = vst [vmem:[#allocation55_spill] sm:$0xff] %v2718_v58  ;;  %v2752_v36 = vpack.c.bf16 %v3705_v41, %v3704_v16  ;;  %v168_v48 = vand.u32 4294901760, %v167_v17  ;;  %v185_v53 = vand.u32 4294901760, %v184_v27  ;;  %v3710_v41 = vand.u32 4294901760, %v2384_v0  ;;  %1908 = vmatpush1.bf16.msra.mxu1 %v2700_v49  ;;  %1693 = vmatprep.subr.bf16.mxu0 %v3676_v39  ;;  %p2122_p0 = scmp.ne.s32.totalorder %s1650_s28, %s2121_s29  ;;  %p2127_p2 = scmp.lt.s32.totalorder %s2121_s29, %s2121_s29 }
  0x30   :  { %v946_v61 = vand.u32 4294901760, %v945_v57  ;;  %v3711_v16 = vand.u32 4294901760, %v2693_v5  ;;  %v198_v58 = vsub.f32 %v2389_v1, %v3712_v2  ;;  %v3713_v28 = vand.u32 4294901760, %v2394_v4  ;;  %1909 = vmatprep.subr.bf16.mxu1 %v3676_v39 }
  0x31   :  { %3706 = vst [vmem:[#allocation56_spill] sm:$0xff] %v2752_v36  ;;  %v969_v17 = vsub.f32 %v2384_v0, %v3710_v41  ;;  %169 = vmatprep.mubr.f32.mxu0 %v168_v48  ;;  %v3714_v27 = vand.u32 4294901760, %v2406_v6  ;;  %v3715_v57 = vand.u32 4294901760, %v2411_v7  ;;  %v3716_v2 = vand.u32 4294901760, %v2480_v35  ;;  %p2128_p3 = por %p2127_p2, %p2126_p1 }
  0x32   :  { %v951_v3 = vsub.f32 %v2693_v5, %v3711_v16  ;;  %v205_v47 = vsub.f32 %v2394_v4, %v3713_v28  ;;  %v2793_v28 = vand.u32 4294901760, %v2741_v52  ;;  %947 = vmatprep.mubr.f32.mxu1 %v946_v61  ;;  %1695 = vmatpush1.bf16.msra.mxu0 %v2706_v30  ;;  %v1697_v16 = vpack.c.bf16 %v192_v50, %v185_v53 }
  0x33   :  { %v976_v41 = vsub.f32 %v2406_v6, %v3714_v27  ;;  %v983_v49 = vsub.f32 %v2411_v7, %v3715_v57  ;;  %v2790_v23 = vsub.f32 %v2480_v35, %v3716_v2  ;;  %v2799_v57 = vand.u32 4294901760, %v2744_v54  ;;  %1911 = vmatpush1.bf16.msra.mxu1 %v2752_v36  ;;  %p2129_p4 = pnand %p2128_p3, %p2122_p0 }
  0x34   :  { %3718 = vst [vmem:[#allocation58_spill] sm:$0xff] %v2793_v28  ;;  %v963_v5 = vand.u32 4294901760, %v962_v21  ;;  %v970_v7 = vand.u32 4294901760, %v969_v17  ;;  %v3594_v35 = vmov 0.0   ;;  %v174_v2 = vand.u32 4294901760, %v173_v20 }
  0x35   :  { %3717 = vst [vmem:[#allocation57_spill] sm:$0xff] %v2790_v23  ;;  %3719 = vst [vmem:[#allocation59_spill] sm:$0xff] %v2799_v57  ;;  %147 = vmatprep.subr.mxu0 %v3594_v35  ;;  %v952_v6 = vand.u32 4294901760, %v951_v3  ;;  %v199_v61 = vand.u32 4294901760, %v198_v58  ;;  %v206_v4 = vand.u32 4294901760, %v205_v47  ;;  %925 = vmatprep.subr.mxu1 %v3594_v35  ;;  %v977_v27 = vand.u32 4294901760, %v976_v41 }
  0x36   :  { %v984_v48 = vand.u32 4294901760, %v983_v49  ;;  %v3720_v30 = vand.u32 4294901760, %v2416_v8  ;;  %v3721_v53 = vand.u32 4294901760, %v2419_v9  ;;  %v3722_v21 = vand.u32 4294901760, %v2422_v10  ;;  %149 = vmatpush1.msra.mxu0 %v2793_v28 }
  0x37   :  { %v3723_v20 = vand.u32 4294901760, %v2430_v14  ;;  %v3724_v47 = vand.u32 4294901760, %v2485_v37  ;;  %v1913_v41 = vpack.c.bf16 %v970_v7, %v963_v5  ;;  %v3726_v35 = vand.u32 4294901760, %v2495_v42  ;;  %927 = vmatpush1.msra.mxu1 %v2799_v57  ;;  %1696 = vmatprep.subr.bf16.mxu0 %v3676_v39 }
  0x38   :  { %v212_v1 = vsub.f32 %v2416_v8, %v3720_v30  ;;  %v219_v50 = vsub.f32 %v2419_v9, %v3721_v53  ;;  %v990_v17 = vsub.f32 %v2422_v10, %v3722_v21  ;;  %v3727_v3 = vand.u32 4294901760, %v2500_v44  ;;  %1912 = vmatprep.subr.bf16.mxu1 %v3676_v39  ;;  %175 = vmatmul.mubr.f32.vlgmr.msra.gmra.mrb[0].mxu0 %v174_v2 }
  0x39   :  { %v997_v58 = vsub.f32 %v2430_v14, %v3723_v20  ;;  %v2821_v30 = vsub.f32 %v2485_v37, %v3724_v47  ;;  %v2829_v20 = vsub.f32 %v2495_v42, %v3726_v35  ;;  %v3598_v37 = vand.u32 4294901760, %v2469_v29  ;;  %1698 = vmatpush1.bf16.msra.mxu0 %v1697_v16  ;;  %953 = vmatmul.mubr.f32.vlgmr.msra.gmra.mrb[0].mxu1 %v952_v6 }
  0x3a   :  { %v2834_v49 = vsub.f32 %v2500_v44, %v3727_v3  ;;  %v1700_v5 = vpack.c.bf16 %v206_v4, %v199_v61  ;;  %v1916_v47 = vpack.c.bf16 %v984_v48, %v977_v27  ;;  %v213_v42 = vand.u32 4294901760, %v212_v1  ;;  %1914 = vmatpush1.bf16.msra.mxu1 %v1913_v41  ;;  %1699 = vmatprep.subr.bf16.mxu0 %v3676_v39 }
  0x3b   :  { %3725 = vst [vmem:[#allocation60_spill] sm:$0xff] %v2821_v30  ;;  %v220_v35 = vand.u32 4294901760, %v219_v50  ;;  %v991_v21 = vand.u32 4294901760, %v990_v17  ;;  %v998_v44 = vand.u32 4294901760, %v997_v58  ;;  %v3728_v3 = vand.u32 4294901760, %v2445_v19  ;;  %1915 = vmatprep.subr.bf16.mxu1 %v3676_v39  ;;  %370 = vmatprep.mubr.f32.mxu0 %v2658_v40 }
  0x3c   :  { %v3729_v36 = vand.u32 4294901760, %v2450_v24  ;;  %v3730_v4 = vand.u32 4294901760, %v2453_v25  ;;  %v3731_v16 = vand.u32 4294901760, %v2456_v26  ;;  %v3599_v48 = vand.u32 4294901760, %v2472_v31  ;;  %1148 = vmatprep.mubr.f32.mxu1 %v2689_v43 }
  0x3d   :  { %v226_v53 = vsub.f32 %v2445_v19, %v3728_v3  ;;  %v3732_v2 = vand.u32 4294901760, %v2466_v34  ;;  %v247_v61 = vsub.f32 %v2469_v29, %v3598_v37  ;;  %v3733_v58 = vand.u32 4294901760, %v2526_v51  ;;  %1701 = vmatpush1.bf16.msra.mxu0 %v1700_v5 }
  0x3e   :  { %v233_v7 = vsub.f32 %v2450_v24, %v3729_v36  ;;  %v1004_v1 = vsub.f32 %v2453_v25, %v3730_v4  ;;  %v1011_v6 = vsub.f32 %v2456_v26, %v3731_v16  ;;  %v3734_v3 = vand.u32 4294901760, %v2543_v12  ;;  %1917 = vmatpush1.bf16.msra.mxu1 %v1916_v47  ;;  %1702 = vmatprep.subr.bf16.mxu0 %v3676_v39 }
  0x3f   :  { %v240_v36 = vsub.f32 %v2466_v34, %v3732_v2  ;;  %v2869_v41 = vsub.f32 %v2526_v51, %v3733_v58  ;;  %v3600_v16 = vand.u32 4294901760, %v2509_v55  ;;  %v1703_v37 = vpack.c.bf16 %v220_v35, %v213_v42  ;;  %1918 = vmatprep.subr.bf16.mxu1 %v3676_v39 }
  0x40   :  { %v2874_v4 = vsub.f32 %v2543_v12, %v3734_v3  ;;  %v1919_v17 = vpack.c.bf16 %v998_v44, %v991_v21  ;;  %v227_v50 = vand.u32 4294901760, %v226_v53  ;;  %v234_v27 = vand.u32 4294901760, %v233_v7 }
  0x41   :  { %v1005_v51 = vand.u32 4294901760, %v1004_v1  ;;  %v1012_v58 = vand.u32 4294901760, %v1011_v6  ;;  %v1018_v12 = vsub.f32 %v2472_v31, %v3599_v48  ;;  %v3735_v3 = vand.u32 4294901760, %v2475_v32  ;;  %1704 = vmatpush1.bf16.msra.mxu0 %v1703_v37 }
  0x42   :  { %v241_v5 = vand.u32 4294901760, %v240_v36  ;;  %v248_v42 = vand.u32 4294901760, %v247_v61  ;;  %v3736_v53 = vand.u32 4294901760, %v2488_v38  ;;  %v3737_v7 = vand.u32 4294901760, %v2502_v45  ;;  %1920 = vmatpush1.bf16.msra.mxu1 %v1919_v17  ;;  %1705 = vmatprep.subr.bf16.mxu0 %v3676_v39 }
  0x43   :  { %v1025_v2 = vsub.f32 %v2475_v32, %v3735_v3  ;;  %v1032_v35 = vsub.f32 %v2509_v55, %v3600_v16  ;;  %v3738_v44 = vand.u32 4294901760, %v2512_v11  ;;  %v3739_v61 = vand.u32 4294901760, %v2548_v13  ;;  %1921 = vmatprep.subr.bf16.mxu1 %v3676_v39 }
  0x44   :  { %v254_v21 = vsub.f32 %v2488_v38, %v3736_v53  ;;  %v261_v47 = vsub.f32 %v2502_v45, %v3737_v7  ;;  %v1706_v53 = vpack.c.bf16 %v234_v27, %v227_v50  ;;  %v3740_v16 = vand.u32 4294901760, %v2561_v18 }
  0x45   :  { %v1039_v1 = vsub.f32 %v2512_v11, %v3738_v44  ;;  %v2904_v3 = vsub.f32 %v2548_v13, %v3739_v61  ;;  %v1922_v44 = vpack.c.bf16 %v1012_v58, %v1005_v51  ;;  %v1019_v36 = vand.u32 4294901760, %v1018_v12 }
  0x46   :  { %v2911_v43 = vsub.f32 %v2561_v18, %v3740_v16  ;;  %v1026_v6 = vand.u32 4294901760, %v1025_v2  ;;  %v3741_v13 = vand.u32 4294901760, %v2566_v22  ;;  %v1709_v27 = vpack.c.bf16 %v248_v42, %v241_v5  ;;  %1707 = vmatpush1.bf16.msra.mxu0 %v1706_v53  ;;  %v3746_v42 = vld [vmem:[#allocation28_spill] sm:$0xff]  ;;  %v3752_v5 = vld [vmem:[#allocation34_spill] sm:$0xff] }
  0x47   :  { %v255_v50 = vand.u32 4294901760, %v254_v21  ;;  %v262_v61 = vand.u32 4294901760, %v261_v47  ;;  %v1033_v48 = vand.u32 4294901760, %v1032_v35  ;;  %v1040_v7 = vand.u32 4294901760, %v1039_v1  ;;  %v3747_v47 = vld [vmem:[#allocation33_spill] sm:$0xff]  ;;  %1923 = vmatpush1.bf16.msra.mxu1 %v1922_v44  ;;  %1708 = vmatprep.subr.bf16.mxu0 %v3676_v39 }
  0x48   :  { %v2917_v37 = vsub.f32 %v2566_v22, %v3741_v13  ;;  %v3742_v18 = vand.u32 4294901760, %v2517_v56  ;;  %v3743_v16 = vand.u32 4294901760, %v2519_v15  ;;  %v3744_v51 = vand.u32 4294901760, %v2532_v59  ;;  %v3749_v13 = vld [vmem:[#allocation30_spill] sm:$0xff]  ;;  %1924 = vmatprep.subr.bf16.mxu1 %v3676_v39 }
  0x49   :  { %v3745_v58 = vand.u32 4294901760, %v2534_v60  ;;  %v3748_v35 = vand.u32 4294901760, %v3747_v47  ;;  %v1925_v53 = vpack.c.bf16 %v1026_v6, %v1019_v36  ;;  %v3751_v40 = vand.u32 4294901760, %v2589_v46 }
  0x4a   :  { %v268_v17 = vsub.f32 %v2517_v56, %v3742_v18  ;;  %v275_v2 = vsub.f32 %v2519_v15, %v3743_v16  ;;  %v1046_v22 = vsub.f32 %v2532_v59, %v3744_v51  ;;  %v3750_v16 = vld [vmem:[#allocation31_spill] sm:$0xff]  ;;  %v3753_v21 = vand.u32 4294901760, %v3752_v5  ;;  %1710 = vmatpush1.bf16.msra.mxu0 %v1709_v27 }
  0x4b   :  { %v1053_v12 = vsub.f32 %v2534_v60, %v3745_v58  ;;  %v2937_v1 = vsub.f32 %v3747_v47, %v3748_v35  ;;  %v2945_v58 = vsub.f32 %v2589_v46, %v3751_v40  ;;  %v3611_v44 = vand.u32 4294901760, %v2790_v23  ;;  %1926 = vmatpush1.bf16.msra.mxu1 %v1925_v53  ;;  %1711 = vmatprep.subr.bf16.mxu0 %v3676_v39 }
  0x4c   :  { %v2950_v60 = vsub.f32 %v3752_v5, %v3753_v21  ;;  %v1712_v36 = vpack.c.bf16 %v262_v61, %v255_v50  ;;  %v1928_v47 = vpack.c.bf16 %v1040_v7, %v1033_v48  ;;  %v269_v35 = vand.u32 4294901760, %v268_v17  ;;  %v3758_v17 = vld [vmem:[#allocation37_spill] sm:$0xff]  ;;  %1927 = vmatprep.subr.bf16.mxu1 %v3676_v39 }
  0x4d   :  { %v276_v51 = vand.u32 4294901760, %v275_v2  ;;  %v1047_v18 = vand.u32 4294901760, %v1046_v22  ;;  %v1054_v59 = vand.u32 4294901760, %v1053_v12  ;;  %v3754_v46 = vand.u32 4294901760, %v2538_v62 }
  0x4e   :  { %v3755_v5 = vand.u32 4294901760, %v3746_v42  ;;  %v3756_v6 = vand.u32 4294901760, %v3749_v13  ;;  %v3757_v7 = vand.u32 4294901760, %v3750_v16  ;;  %v3759_v2 = vand.u32 4294901760, %v3758_v17  ;;  %1713 = vmatpush1.bf16.msra.mxu0 %v1712_v36 }
  0x4f   :  { %v282_v40 = vsub.f32 %v2538_v62, %v3754_v46  ;;  %v296_v12 = vsub.f32 %v2790_v23, %v3611_v44  ;;  %v3761_v53 = vand.u32 4294901760, %v2821_v30  ;;  %v1715_v50 = vpack.c.bf16 %v276_v51, %v269_v35  ;;  %1929 = vmatpush1.bf16.msra.mxu1 %v1928_v47  ;;  %1714 = vmatprep.subr.bf16.mxu0 %v3676_v39 }
  0x50   :  { %v289_v21 = vsub.f32 %v3746_v42, %v3755_v5  ;;  %v1060_v48 = vsub.f32 %v3749_v13, %v3756_v6  ;;  %v1067_v27 = vsub.f32 %v3750_v16, %v3757_v7  ;;  %v2973_v22 = vsub.f32 %v3758_v17, %v3759_v2  ;;  %v3762_v5 = vld [vmem:[#allocation38_spill] sm:$0xff]  ;;  %1930 = vmatprep.subr.bf16.mxu1 %v3676_v39 }
  0x51   :  { %v303_v6 = vsub.f32 %v2821_v30, %v3761_v53  ;;  %v3763_v7 = vand.u32 4294901760, %v3762_v5  ;;  %v3617_v17 = vand.u32 4294901760, %v2874_v4  ;;  %v3616_v2 = vand.u32 4294901760, %v2904_v3 }
  0x52   :  { %3760 = vst [vmem:[#allocation28_spill] sm:$0xff] %v2973_v22  ;;  %v1931_v16 = vpack.c.bf16 %v1054_v59, %v1047_v18  ;;  %v283_v13 = vand.u32 4294901760, %v282_v40  ;;  %v290_v44 = vand.u32 4294901760, %v289_v21  ;;  %v3618_v23 = vand.u32 4294901760, %v2911_v43  ;;  %1716 = vmatpush1.bf16.msra.mxu0 %v1715_v50 }
  0x53   :  { %v2986_v61 = vsub.f32 %v3762_v5, %v3763_v7  ;;  %v1061_v53 = vand.u32 4294901760, %v1060_v48  ;;  %v1068_v46 = vand.u32 4294901760, %v1067_v27  ;;  %v3765_v30 = vand.u32 4294901760, %v2829_v20  ;;  %v3767_v7 = vld [vmem:[#allocation44_spill] sm:$0xff]  ;;  %1717 = vmatprep.subr.bf16.mxu0 %v3676_v39 }
  0x54   :  { %v3766_v51 = vand.u32 4294901760, %v2834_v49  ;;  %v3768_v36 = vand.u32 4294901760, %v3767_v7  ;;  %v297_v18 = vand.u32 4294901760, %v296_v12  ;;  %v304_v47 = vand.u32 4294901760, %v303_v6  ;;  %1932 = vmatpush1.bf16.msra.mxu1 %v1931_v16 }
  0x55   :  { %3764 = vst [vmem:[#allocation33_spill] sm:$0xff] %v2986_v61  ;;  %v1074_v5 = vsub.f32 %v2829_v20, %v3765_v30  ;;  %v3770_v40 = vand.u32 4294901760, %v2869_v41  ;;  %v317_v30 = vsub.f32 %v2874_v4, %v3617_v17  ;;  %v1088_v48 = vsub.f32 %v2904_v3, %v3616_v2  ;;  %1933 = vmatprep.subr.bf16.mxu1 %v3676_v39 }
  0x56   :  { %v1081_v35 = vsub.f32 %v2834_v49, %v3766_v51  ;;  %v3001_v59 = vsub.f32 %v3767_v7, %v3768_v36  ;;  %v3771_v7 = vand.u32 4294901760, %v2656_v33  ;;  %v1718_v6 = vpack.c.bf16 %v290_v44, %v283_v13 }
  0x57   :  { %v310_v21 = vsub.f32 %v2869_v41, %v3770_v40  ;;  %v1095_v36 = vsub.f32 %v2911_v43, %v3618_v23  ;;  %v1934_v2 = vpack.c.bf16 %v1068_v46, %v1061_v53  ;;  %v1075_v17 = vand.u32 4294901760, %v1074_v5 }
  0x58   :  { %3769 = vst [vmem:[#allocation34_spill] sm:$0xff] %v3001_v59  ;;  %v3018_v12 = vsub.f32 %v2656_v33, %v3771_v7  ;;  %v1082_v27 = vand.u32 4294901760, %v1081_v35  ;;  %v3619_v51 = vand.u32 4294901760, %v2950_v60  ;;  %v1721_v33 = vpack.c.bf16 %v304_v47, %v297_v18  ;;  %1719 = vmatpush1.bf16.msra.mxu0 %v1718_v6 }
  0x59   :  { %v311_v7 = vand.u32 4294901760, %v310_v21  ;;  %v318_v50 = vand.u32 4294901760, %v317_v30  ;;  %v1089_v13 = vand.u32 4294901760, %v1088_v48  ;;  %v3773_v44 = vand.u32 4294901760, %v2917_v37  ;;  %1935 = vmatpush1.bf16.msra.mxu1 %v1934_v2  ;;  %1720 = vmatprep.subr.bf16.mxu0 %v3676_v39 }
  0x5a   :  { %3772 = vst [vmem:[#allocation37_spill] sm:$0xff] %v3018_v12  ;;  %v3774_v40 = vand.u32 4294901760, %v2937_v1  ;;  %v1096_v46 = vand.u32 4294901760, %v1095_v36  ;;  %v3775_v53 = vand.u32 4294901760, %v2945_v58  ;;  %v3622_v35 = vand.u32 4294901760, %v2973_v22  ;;  %1936 = vmatprep.subr.bf16.mxu1 %v3676_v39 }
  0x5b   :  { %v324_v23 = vsub.f32 %v2917_v37, %v3773_v44  ;;  %v3621_v18 = vand.u32 4294901760, %v2986_v61  ;;  %v1937_v47 = vpack.c.bf16 %v1082_v27, %v1075_v17  ;;  %v1109_v21 = vsub.f32 %v2950_v60, %v3619_v51 }
  0x5c   :  { %v331_v16 = vsub.f32 %v2937_v1, %v3774_v40  ;;  %v1102_v5 = vsub.f32 %v2945_v58, %v3775_v53  ;;  %v3620_v30 = vand.u32 4294901760, %v3001_v59  ;;  %v3625_v48 = vand.u32 4294901760, %v3018_v12  ;;  %1722 = vmatpush1.bf16.msra.mxu0 %v1721_v33  ;;  %v3776_v33 = vld [vmem:[#allocation13_spill] sm:$0xff] }
  0x5d   :  { %v3046_v6 = vsub.f32 %v2741_v52, %v2793_v28  ;;  %v3051_v2 = vsub.f32 %v2744_v54, %v2799_v57  ;;  %v1724_v36 = vpack.c.bf16 %v318_v50, %v311_v7  ;;  %v325_v17 = vand.u32 4294901760, %v324_v23  ;;  %1938 = vmatpush1.bf16.msra.mxu1 %v1937_v47  ;;  %1723 = vmatprep.subr.bf16.mxu0 %v3676_v39  ;;  %v3778_v50 = vld [vmem:[#allocation15_spill] sm:$0xff] }
  0x5e   :  { %v332_v27 = vand.u32 4294901760, %v331_v16  ;;  %v1940_v40 = vpack.c.bf16 %v1096_v46, %v1089_v13  ;;  %v1103_v44 = vand.u32 4294901760, %v1102_v5  ;;  %v338_v53 = vsub.f32 %v2973_v22, %v3622_v35  ;;  %1939 = vmatprep.subr.bf16.mxu1 %v3676_v39 }
  0x5f   :  { %v345_v52 = vsub.f32 %v2986_v61, %v3621_v18  ;;  %v1110_v51 = vand.u32 4294901760, %v1109_v21  ;;  %v1116_v23 = vsub.f32 %v3001_v59, %v3620_v30  ;;  %v1123_v54 = vsub.f32 %v3018_v12, %v3625_v48  ;;  %v3784_v21 = vld [vmem:[#allocation17_spill] sm:$0xff]  ;;  %v3786_v18 = vld [vmem:[#allocation18_spill] sm:$0xff]  ;;  %v3789_v48 = vld [vmem:[#allocation19_spill] sm:$0xff] }
  0x60   :  { %v3777_v7 = vand.u32 4294901760, %v3776_v33  ;;  %v3779_v13 = vand.u32 4294901760, %v3778_v50  ;;  %v3781_v46 = vand.u32 4294901760, %v2379_v63  ;;  %v3782_v5 = vand.u32 4294901760, %v2384_v0  ;;  %v3791_v12 = vld [vmem:[#allocation20_spill] sm:$0xff]  ;;  %1725 = vmatpush1.bf16.msra.mxu0 %v1724_v36 }
  0x61   :  { %v3785_v30 = vand.u32 4294901760, %v3784_v21  ;;  %v3787_v35 = vand.u32 4294901760, %v3786_v18  ;;  %v3790_v28 = vand.u32 4294901760, %v3789_v48  ;;  %v3792_v59 = vand.u32 4294901760, %v3791_v12  ;;  %1941 = vmatpush1.bf16.msra.mxu1 %v1940_v40  ;;  %1726 = vmatprep.subr.bf16.mxu0 %v3676_v39 }
  0x62   :  { %v3070_v16 = vpack.c.bf16 %v3779_v13, %v3777_v7  ;;  %v3077_v47 = vpack.c.bf16 %v3782_v5, %v3781_v46  ;;  %v3794_v13 = vand.u32 4294901760, %v2416_v8  ;;  %v1727_v46 = vpack.c.bf16 %v332_v27, %v325_v17  ;;  %1942 = vmatprep.subr.bf16.mxu1 %v3676_v39 }
  0x63   :  { %v3083_v57 = vpack.c.bf16 %v3787_v35, %v3785_v30  ;;  %v3089_v7 = vpack.c.bf16 %v3792_v59, %v3790_v28  ;;  %v3796_v5 = vand.u32 4294901760, %v2422_v10  ;;  %v3798_v35 = vand.u32 4294901760, %v2445_v19 }
  0x64   :  { %3780 = vst [vmem:[#allocation38_spill] sm:$0xff] %v3070_v16  ;;  %3783 = vst [vmem:[#allocation44_spill] sm:$0xff] %v3077_v47  ;;  %v3795_v16 = vand.u32 4294901760, %v2419_v9  ;;  %v3797_v47 = vand.u32 4294901760, %v2430_v14  ;;  %v3799_v30 = vand.u32 4294901760, %v2450_v24  ;;  %v339_v28 = vand.u32 4294901760, %v338_v53  ;;  %1728 = vmatpush1.bf16.msra.mxu0 %v1727_v46 }
  0x65   :  { %3788 = vst [vmem:[#allocation13_spill] sm:$0xff] %v3083_v57  ;;  %3793 = vst [vmem:[#allocation15_spill] sm:$0xff] %v3089_v7  ;;  %v346_v59 = vand.u32 4294901760, %v345_v52  ;;  %v3637_v7 = vand.u32 4294901760, %v3046_v6  ;;  %v3801_v17 = vand.u32 4294901760, %v2456_v26  ;;  %v3802_v36 = vand.u32 4294901760, %v2466_v34  ;;  %1729 = vmatprep.subr.bf16.mxu0 %v3676_v39 }
  0x66   :  { %v3095_v61 = vpack.c.bf16 %v3795_v16, %v3794_v13  ;;  %v3101_v22 = vpack.c.bf16 %v3797_v47, %v3796_v5  ;;  %v3107_v57 = vpack.c.bf16 %v3799_v30, %v3798_v35  ;;  %v3800_v16 = vand.u32 4294901760, %v2453_v25 }
  0x67   :  { %v1943_v47 = vpack.c.bf16 %v1110_v51, %v1103_v44  ;;  %v1117_v13 = vand.u32 4294901760, %v1116_v23  ;;  %v1124_v5 = vand.u32 4294901760, %v1123_v54  ;;  %v3636_v35 = vand.u32 4294901760, %v3051_v2 }
  0x68   :  { %v3114_v27 = vpack.c.bf16 %v3801_v17, %v3800_v16  ;;  %v3803_v53 = vand.u32 4294901760, %v2469_v29  ;;  %v1730_v30 = vpack.c.bf16 %v346_v59, %v339_v28  ;;  %v352_v40 = vsub.f32 %v3046_v6, %v3637_v7  ;;  %v3829_v7 = vld [vmem:[#allocation60_spill] sm:$0xff] }
  0x69   :  { %v3804_v51 = vand.u32 4294901760, %v2472_v31  ;;  %v3805_v44 = vand.u32 4294901760, %v2475_v32  ;;  %1944 = vmatpush1.bf16.msra.mxu1 %v1943_v47  ;;  %v1946_v54 = vpack.c.bf16 %v1124_v5, %v1117_v13  ;;  %v1130_v16 = vsub.f32 %v3051_v2, %v3636_v35 }
  0x6a   :  { %v3123_v52 = vpack.c.bf16 %v3803_v53, %v3802_v36  ;;  %1945 = vmatprep.subr.bf16.mxu1 %v3676_v39  ;;  %v3806_v46 = vand.u32 4294901760, %v2488_v38  ;;  %v3807_v28 = vand.u32 4294901760, %v2502_v45  ;;  %1731 = vmatpush1.bf16.msra.mxu0 %v1730_v30  ;;  %v353_v17 = vand.u32 4294901760, %v352_v40 }
  0x6b   :  { %v3132_v23 = vpack.c.bf16 %v3805_v44, %v3804_v51  ;;  %v3808_v36 = vand.u32 4294901760, %v2509_v55  ;;  %v3809_v47 = vand.u32 4294901760, %v2512_v11  ;;  %v3810_v13 = vmov 0.0  }
  0x6c   :  { %v3143_v59 = vpack.c.bf16 %v3807_v28, %v3806_v46  ;;  %348 = vmatprep.subr.mxu0 %v3810_v13  ;;  %v1131_v5 = vand.u32 4294901760, %v1130_v16  ;;  %v1733_v51 = vpack.c.bf16 %v3778_v50, %v3776_v33  ;;  %v3811_v44 = vand.u32 4294901760, %v2517_v56  ;;  %v3813_v28 = vld [vmem:[#allocation25_spill] sm:$0xff]  ;;  %v3818_v50 = vld [vmem:[#allocation46_spill] sm:$0xff] }
  0x6d   :  { %v3149_v53 = vpack.c.bf16 %v3809_v47, %v3808_v36  ;;  %1947 = vmatpush1.bf16.msra.mxu1 %v1946_v54  ;;  %v3812_v30 = vand.u32 4294901760, %v2519_v15  ;;  %v1949_v46 = vpack.c.bf16 %v2384_v0, %v2379_v63  ;;  %v3814_v54 = vand.u32 4294901760, %v3813_v28  ;;  %v3815_v36 = vld [vmem:[#allocation26_spill] sm:$0xff]  ;;  %v3817_v33 = vld [vmem:[#allocation41_spill] sm:$0xff] }
  0x6e   :  { %1126 = vmatprep.subr.mxu1 %v3810_v13  ;;  %354 = vmatpush1.msra.mxu0 %v353_v17  ;;  %v3816_v47 = vand.u32 4294901760, %v3815_v36  ;;  %v1736_v17 = vpack.c.bf16 %v3786_v18, %v3784_v21  ;;  %v3819_v63 = vand.u32 4294901760, %v2538_v62  ;;  %v3820_v0 = vand.u32 4294901760, %v3746_v42  ;;  %v3825_v18 = vld [vmem:[#allocation50_spill] sm:$0xff]  ;;  %v3826_v21 = vld [vmem:[#allocation55_spill] sm:$0xff] }
  0x6f   :  { %v3159_v40 = vpack.c.bf16 %v3812_v30, %v3811_v44  ;;  %1732 = vmatprep.subr.bf16.mxu0 %v3676_v39  ;;  %372 = vmatmul.mubr.f32.vlgmr.msra.gmra.mrb[0].mxu0 %v3817_v33  ;;  %v3821_v30 = vld [vmem:[#allocation30_spill] sm:$0xff] }
  0x70   :  { %v3167_v16 = vpack.c.bf16 %v3816_v47, %v3814_v54  ;;  %1734 = vmatpush1.bf16.msra.mxu0 %v1733_v51  ;;  %v3179_v44 = vpack.c.bf16 %v3820_v0, %v3819_v63  ;;  %v3822_v54 = vand.u32 4294901760, %v3821_v30  ;;  %v3823_v51 = vld [vmem:[#allocation31_spill] sm:$0xff]  ;;  %493 = vmatprep.mubr.f32.mxu0 %v3825_v18  ;;  %v3827_v63 = vld [vmem:[#allocation57_spill] sm:$0xff] }
  0x71   :  { %1132 = vmatpush1.msra.mxu1 %v1131_v5  ;;  %1735 = vmatprep.subr.bf16.mxu0 %v3676_v39  ;;  %v1952_v5 = vpack.c.bf16 %v3791_v12, %v3789_v48  ;;  %v3824_v47 = vand.u32 4294901760, %v3823_v51  ;;  %v3828_v0 = vand.u32 4294901760, %v3827_v63  ;;  %v3830_v12 = vand.u32 4294901760, %v3829_v7 }
  0x72   :  { %1948 = vmatprep.subr.bf16.mxu1 %v3676_v39  ;;  %1150 = vmatmul.mubr.f32.vlgmr.msra.gmra.mrb[0].mxu1 %v3818_v50  ;;  %v3832_v50 = vand.u32 4294901760, %v2834_v49 }
  0x73   :  { %1950 = vmatpush1.bf16.msra.mxu1 %v1949_v46  ;;  %v3188_v35 = vpack.c.bf16 %v3824_v47, %v3822_v54  ;;  %1271 = vmatprep.mubr.f32.mxu1 %v3826_v21  ;;  %v1739_v46 = vpack.c.bf16 %v2419_v9, %v2416_v8  ;;  %v3199_v48 = vpack.c.bf16 %v3830_v12, %v3828_v0  ;;  %v3831_v47 = vand.u32 4294901760, %v2829_v20 }
  0x74   :  { %1951 = vmatprep.subr.bf16.mxu1 %v3676_v39  ;;  %1737 = vmatpush1.bf16.msra.mxu0 %v1736_v17  ;;  %v1955_v54 = vpack.c.bf16 %v2430_v14, %v2422_v10  ;;  %v1742_v8 = vpack.c.bf16 %v2450_v24, %v2445_v19  ;;  %v3833_v9 = vand.u32 4294901760, %v2869_v41  ;;  %v1958_v10 = vpack.c.bf16 %v2456_v26, %v2453_v25 }
  0x75   :  { %1738 = vmatprep.subr.bf16.mxu0 %v3676_v39  ;;  %v3208_v17 = vpack.c.bf16 %v3832_v50, %v3831_v47  ;;  %v3835_v14 = vand.u32 4294901760, %v2904_v3  ;;  %v3836_v50 = vand.u32 4294901760, %v2911_v43  ;;  %v1745_v19 = vpack.c.bf16 %v2469_v29, %v2466_v34  ;;  %v3841_v29 = vld [vmem:[#allocation28_spill] sm:$0xff] }
  0x76   :  { %v3837_v24 = vand.u32 4294901760, %v2917_v37  ;;  %v3838_v12 = vand.u32 4294901760, %v2937_v1  ;;  %v1961_v25 = vpack.c.bf16 %v2475_v32, %v2472_v31  ;;  %v3839_v26 = vand.u32 4294901760, %v2945_v58  ;;  %v3845_v32 = vld [vmem:[#allocation34_spill] sm:$0xff] }
  0x77   :  { %1953 = vmatpush1.bf16.msra.mxu1 %v1952_v5  ;;  %v3834_v5 = vand.u32 4294901760, %v2874_v4  ;;  %v3840_v47 = vand.u32 4294901760, %v2950_v60  ;;  %v1748_v34 = vpack.c.bf16 %v2502_v45, %v2488_v38  ;;  %v1964_v31 = vpack.c.bf16 %v2512_v11, %v2509_v55 }
  0x78   :  { %1954 = vmatprep.subr.bf16.mxu1 %v3676_v39  ;;  %1740 = vmatpush1.bf16.msra.mxu0 %v1739_v46  ;;  %v3226_v46 = vpack.c.bf16 %v3836_v50, %v3835_v14  ;;  %v3846_v50 = vand.u32 4294901760, %v3845_v32  ;;  %v1751_v38 = vpack.c.bf16 %v2519_v15, %v2517_v56  ;;  %v1967_v45 = vpack.c.bf16 %v3815_v36, %v3813_v28  ;;  %v3856_v28 = vld [vmem:[#allocation8_spill] sm:$0xff]  ;;  %v3857_v36 = vld [vmem:[#allocation9_spill] sm:$0xff] }
  0x79   :  { %v3217_v0 = vpack.c.bf16 %v3834_v5, %v3833_v9  ;;  %1741 = vmatprep.subr.bf16.mxu0 %v3676_v39  ;;  %v3842_v9 = vand.u32 4294901760, %v3841_v29  ;;  %v3843_v5 = vld [vmem:[#allocation33_spill] sm:$0xff]  ;;  %v1754_v11 = vpack.c.bf16 %v3746_v42, %v2538_v62  ;;  %v1970_v55 = vpack.c.bf16 %v3823_v51, %v3821_v30  ;;  %v3858_v30 = vld [vmem:[#allocation10_spill] sm:$0xff]  ;;  %v3859_v51 = vld [vmem:[#allocation11_spill] sm:$0xff] }
  0x7a   :  { %v1757_v15 = vpack.c.bf16 %v3829_v7, %v3827_v63  ;;  %v1973_v56 = vpack.c.bf16 %v2834_v49, %v2829_v20  ;;  %v1760_v62 = vpack.c.bf16 %v2874_v4, %v2869_v41  ;;  %v1976_v42 = vpack.c.bf16 %v2911_v43, %v2904_v3  ;;  %v3850_v41 = vld [vmem:[#allocation5_spill] sm:$0xff]  ;;  %v3851_v4 = vld [vmem:[#allocation52_spill] sm:$0xff]  ;;  %v3852_v3 = vld [vmem:[#allocation6_spill] sm:$0xff] }
  0x7b   :  { %1956 = vmatpush1.bf16.msra.mxu1 %v1955_v54  ;;  %v3235_v54 = vpack.c.bf16 %v3838_v12, %v3837_v24  ;;  %v3847_v24 = vld [vmem:[#allocation37_spill] sm:$0xff]  ;;  %v1763_v7 = vpack.c.bf16 %v2937_v1, %v2917_v37  ;;  %v1979_v49 = vpack.c.bf16 %v2950_v60, %v2945_v58  ;;  %v1766_v20 = vpack.c.bf16 %v3843_v5, %v3841_v29  ;;  %v3849_v60 = vld [vmem:[#allocation48_spill] sm:$0xff]  ;;  %v3855_v58 = vld [vmem:[#allocation7_spill] sm:$0xff] }
  0x7c   :  { %1957 = vmatprep.subr.bf16.mxu1 %v3676_v39  ;;  %1743 = vmatpush1.bf16.msra.mxu0 %v1742_v8  ;;  %v3244_v8 = vpack.c.bf16 %v3840_v47, %v3839_v26  ;;  %v3848_v12 = vand.u32 4294901760, %v3847_v24  ;;  %v1982_v43 = vpack.c.bf16 %v3847_v24, %v3845_v32  ;;  %v3853_v37 = vand.u32 4294901760, %v3825_v18  ;;  %v3860_v18 = vld [vmem:[#allocation12_spill] sm:$0xff]  ;;  %v3864_v26 = vld [vmem:[#allocation22_spill] sm:$0xff]  ;;  %v3865_v47 = vld [vmem:[#allocation23_spill] sm:$0xff] }
  0x7d   :  { %1744 = vmatprep.subr.bf16.mxu0 %v3676_v39  ;;  %v3854_v1 = vand.u32 4294901760, %v3826_v21  ;;  %v3861_v21 = vld [vmem:[#allocation14_spill] sm:$0xff]  ;;  %v3862_v63 = vld [vmem:[#allocation16_spill] sm:$0xff] }
  0x7f   :  { %1959 = vmatpush1.bf16.msra.mxu1 %v1958_v10  ;;  %v3844_v10 = vand.u32 4294901760, %v3843_v5  ;;  %v3868_v5 = vld [vmem:[#allocation39_spill] sm:$0xff] }
  0x80   :  { %1960 = vmatprep.subr.bf16.mxu1 %v3676_v39  ;;  %1746 = vmatpush1.bf16.msra.mxu0 %v1745_v19  ;;  %v3262_v19 = vpack.c.bf16 %v3848_v12, %v3846_v50  ;;  %v3870_v50 = vld [vmem:[#allocation42_spill] sm:$0xff] }
  0x81   :  { %v3253_v14 = vpack.c.bf16 %v3844_v10, %v3842_v9  ;;  %1747 = vmatprep.subr.bf16.mxu0 %v3676_v39  ;;  %v3867_v9 = vld [vmem:[#allocation24_spill] sm:$0xff]  ;;  %v1628_v10 = vsel %vm1627_vm2, %v3868_v5, 0.0  ;;  %v1633_v24 = vsel %vm1627_vm2, %v3870_v50, 0.0  ;;  %v3890_v50 = vld [vmem:[#allocation15_spill] sm:$0xff] }
  0x82   :  { %v3886_v5 = vld [vmem:[#allocation44_spill] sm:$0xff] }
  0x83   :  { %1962 = vmatpush1.bf16.msra.mxu1 %v1961_v25  ;;  %v3863_v25 = vld [vmem:[#allocation21_spill] sm:$0xff] }
  0x84   :  { %1963 = vmatprep.subr.bf16.mxu1 %v3676_v39  ;;  %1749 = vmatpush1.bf16.msra.mxu0 %v1748_v34  ;;  %v3866_v34 = vld [vmem:[#allocation35_spill] sm:$0xff] }
  0x85   :  { %1750 = vmatprep.subr.bf16.mxu0 %v3676_v39  ;;  %v1626_v29 = vsel %vm71_vm0, %v3866_v34, 0.0  ;;  %v3884_v34 = vld [vmem:[#allocation38_spill] sm:$0xff] }
  0x86   :  { %v1629_v12 = vadd.f32 %v1628_v10, %v1626_v29  ;;  %v3885_v29 = vand.u32 4294901760, %v3851_v4  ;;  %v3887_v10 = vld [vmem:[#allocation45_spill] sm:$0xff] }
  0x87   :  { %1965 = vmatpush1.bf16.msra.mxu1 %v1964_v31  ;;  %v3869_v31 = vld [vmem:[#allocation40_spill] sm:$0xff] }
  0x88   :  { %1966 = vmatprep.subr.bf16.mxu1 %v3676_v39  ;;  %1752 = vmatpush1.bf16.msra.mxu0 %v1751_v38  ;;  %v1632_v32 = vsel %vm71_vm0, %v3869_v31, 0.0  ;;  %v3871_v38 = vld [vmem:[#allocation27_spill] sm:$0xff] }
  0x89   :  { %1753 = vmatprep.subr.bf16.mxu0 %v3676_v39  ;;  %1630 = vadd.xlane.f32.xlu0 %v1629_v12  ;;  %v3888_v31 = vld [vmem:[#allocation51_spill] sm:$0xff] }
  0x8b   :  { %1968 = vmatpush1.bf16.msra.mxu1 %v1967_v45  ;;  %v1634_v45 = vadd.f32 %v1633_v24, %v1632_v32  ;;  %v3889_v32 = vld [vmem:[#allocation13_spill] sm:$0xff] }
  0x8c   :  { %1969 = vmatprep.subr.bf16.mxu1 %v3676_v39  ;;  %1755 = vmatpush1.bf16.msra.mxu0 %v1754_v11  ;;  %v3872_v11 = vld [vmem:[#allocation29_spill] sm:$0xff] }
  0x8d   :  { %1756 = vmatprep.subr.bf16.mxu0 %v3676_v39  ;;  %1635 = vadd.xlane.f32.xlu0 %v1634_v45 }
  0x8f   :  { %1971 = vmatpush1.bf16.msra.mxu1 %v1970_v55  ;;  %v3873_v55 = vld [vmem:[#allocation32_spill] sm:$0xff] }
  0x90   :  { %1972 = vmatprep.subr.bf16.mxu1 %v3676_v39  ;;  %1758 = vmatpush1.bf16.msra.mxu0 %v1757_v15  ;;  %v3874_v15 = vld [vmem:[#allocation36_spill] sm:$0xff] }
  0x91   :  { %1759 = vmatprep.subr.bf16.mxu0 %v3676_v39 }
  0x93   :  { %1974 = vmatpush1.bf16.msra.mxu1 %v1973_v56  ;;  %v3875_v56 = vld [vmem:[#allocation43_spill] sm:$0xff] }
  0x94   :  { %1975 = vmatprep.subr.bf16.mxu1 %v3676_v39  ;;  %1761 = vmatpush1.bf16.msra.mxu0 %v1760_v62  ;;  %v3876_v62 = vld [vmem:[#allocation47_spill] sm:$0xff] }
  0x95   :  { %1762 = vmatprep.subr.bf16.mxu0 %v3676_v39 }
  0x97   :  { %1977 = vmatpush1.bf16.msra.mxu1 %v1976_v42  ;;  %v3877_v42 = vld [vmem:[#allocation49_spill] sm:$0xff] }
  0x98   :  { %1978 = vmatprep.subr.bf16.mxu1 %v3676_v39  ;;  %1764 = vmatpush1.bf16.msra.mxu0 %v1763_v7  ;;  %v3878_v7 = vld [vmem:[#allocation53_spill] sm:$0xff] }
  0x99   :  { %1765 = vmatprep.subr.bf16.mxu0 %v3676_v39 }
  0x9b   :  { %1980 = vmatpush1.bf16.msra.mxu1 %v1979_v49  ;;  %v3879_v49 = vld [vmem:[#allocation54_spill] sm:$0xff] }
  0x9c   :  { %1981 = vmatprep.subr.bf16.mxu1 %v3676_v39  ;;  %1767 = vmatpush1.bf16.msra.mxu0 %v1766_v20  ;;  %v3880_v20 = vld [vmem:[#allocation56_spill] sm:$0xff] }
  0x9d   :  { %473 = vmatprep.subr.mxu0 %v3810_v13 }
  0x9f   :  { %1983 = vmatpush1.bf16.msra.mxu1 %v1982_v43  ;;  %v3881_v43 = vld [vmem:[#allocation58_spill] sm:$0xff] }
  0xa0   :  { %1251 = vmatprep.subr.mxu1 %v3810_v13  ;;  %476 = vmatpush1.msra.mxu0 %v3046_v6 }
  0xa1   :  { %1768 = vmatprep.subr.bf16.mxu0 %v3676_v39  ;;  %496 = vmatmul.mubr.f32.vlgmr.msra.gmra.mrb[0].mxu0 %v3849_v60 }
  0xa2   :  { %1770 = vmatpush1.bf16.msra.mxu0 %v3850_v41  ;;  %593 = vmatprep.mubr.f32.mxu0 %v3853_v37  ;;  %v3882_v37 = vld [vmem:[#allocation59_spill] sm:$0xff] }
  0xa3   :  { %1254 = vmatpush1.msra.mxu1 %v3051_v2  ;;  %1771 = vmatprep.subr.bf16.mxu0 %v3676_v39 }
  0xa4   :  { %1984 = vmatprep.subr.bf16.mxu1 %v3676_v39  ;;  %1274 = vmatmul.mubr.f32.vlgmr.msra.gmra.mrb[0].mxu1 %v3851_v4 }
  0xa5   :  { %1986 = vmatpush1.bf16.msra.mxu1 %v3852_v3  ;;  %1371 = vmatprep.mubr.f32.mxu1 %v3854_v1  ;;  %v3883_v1 = vand.u32 4294901760, %v3849_v60 }
  0xa6   :  { %1987 = vmatprep.subr.bf16.mxu1 %v3676_v39  ;;  %1773 = vmatpush1.bf16.msra.mxu0 %v3855_v58 }
  0xa7   :  { %1774 = vmatprep.subr.bf16.mxu0 %v3676_v39 }
  0xa9   :  { %1989 = vmatpush1.bf16.msra.mxu1 %v3856_v28 }
  0xaa   :  { %1990 = vmatprep.subr.bf16.mxu1 %v3676_v39  ;;  %1776 = vmatpush1.bf16.msra.mxu0 %v3857_v36 }
  0xab   :  { %1777 = vmatprep.subr.bf16.mxu0 %v3676_v39 }
  0xad   :  { %1992 = vmatpush1.bf16.msra.mxu1 %v3858_v30 }
  0xae   :  { %1993 = vmatprep.subr.bf16.mxu1 %v3676_v39  ;;  %1779 = vmatpush1.bf16.msra.mxu0 %v3859_v51 }
  0xaf   :  { %1780 = vmatprep.subr.bf16.mxu0 %v3676_v39 }
  0xb1   :  { %1995 = vmatpush1.bf16.msra.mxu1 %v3860_v18 }
  0xb2   :  { %1996 = vmatprep.subr.bf16.mxu1 %v3676_v39  ;;  %1782 = vmatpush1.bf16.msra.mxu0 %v3861_v21 }
  0xb3   :  { %1783 = vmatprep.subr.bf16.mxu0 %v3676_v39 }
  0xb5   :  { %1998 = vmatpush1.bf16.msra.mxu1 %v3862_v63 }
  0xb6   :  { %1999 = vmatprep.subr.bf16.mxu1 %v3676_v39  ;;  %1785 = vmatpush1.bf16.msra.mxu0 %v3863_v25 }
  0xb7   :  { %1786 = vmatprep.subr.bf16.mxu0 %v3676_v39 }
  0xb9   :  { %2001 = vmatpush1.bf16.msra.mxu1 %v3864_v26 }
  0xba   :  { %2002 = vmatprep.subr.bf16.mxu1 %v3676_v39  ;;  %1788 = vmatpush1.bf16.msra.mxu0 %v3865_v47 }
  0xbb   :  { %1789 = vmatprep.subr.bf16.mxu0 %v3676_v39 }
  0xbd   :  { %2004 = vmatpush1.bf16.msra.mxu1 %v3867_v9 }
  0xbe   :  { %2005 = vmatprep.subr.bf16.mxu1 %v3676_v39  ;;  %1791 = vmatpush1.bf16.msra.mxu0 %v3871_v38 }
  0xbf   :  { %1792 = vmatprep.subr.bf16.mxu0 %v3676_v39 }
  0xc1   :  { %2007 = vmatpush1.bf16.msra.mxu1 %v3872_v11 }
  0xc2   :  { %2008 = vmatprep.subr.bf16.mxu1 %v3676_v39  ;;  %1794 = vmatpush1.bf16.msra.mxu0 %v3873_v55 }
  0xc3   :  { %1795 = vmatprep.subr.bf16.mxu0 %v3676_v39 }
  0xc5   :  { %2010 = vmatpush1.bf16.msra.mxu1 %v3874_v15 }
  0xc6   :  { %2011 = vmatprep.subr.bf16.mxu1 %v3676_v39  ;;  %1797 = vmatpush1.bf16.msra.mxu0 %v3875_v56 }
  0xc7   :  { %1798 = vmatprep.subr.bf16.mxu0 %v3676_v39 }
  0xc9   :  { %2013 = vmatpush1.bf16.msra.mxu1 %v3876_v62 }
  0xca   :  { %2014 = vmatprep.subr.bf16.mxu1 %v3676_v39  ;;  %1800 = vmatpush1.bf16.msra.mxu0 %v3877_v42 }
  0xcb   :  { %1801 = vmatprep.subr.bf16.mxu0 %v3676_v39 }
  0xcd   :  { %2016 = vmatpush1.bf16.msra.mxu1 %v3878_v7 }
  0xce   :  { %2017 = vmatprep.subr.bf16.mxu1 %v3676_v39  ;;  %1803 = vmatpush1.bf16.msra.mxu0 %v3879_v49 }
  0xcf   :  { %573 = vmatprep.subr.mxu0 %v3810_v13 }
  0xd1   :  { %2019 = vmatpush1.bf16.msra.mxu1 %v3880_v20 }
  0xd2   :  { %1351 = vmatprep.subr.mxu1 %v3810_v13  ;;  %575 = vmatpush1.msra.mxu0 %v3881_v43 }
  0xd3   :  { %1804 = vmatprep.subr.bf16.mxu0 %v3676_v39  ;;  %597 = vmatmul.mubr.f32.vlgmr.msra.gmra.mrb[0].mxu0 %v3883_v1 }
  0xd4   :  { %1806 = vmatpush1.bf16.msra.mxu0 %v3884_v34  ;;  %742 = vmatprep.mubr.f32.mxu0 %v3887_v10 }
  0xd5   :  { %1353 = vmatpush1.msra.mxu1 %v3882_v37  ;;  %1807 = vmatprep.subr.bf16.mxu0 %v3676_v39 }
  0xd6   :  { %2020 = vmatprep.subr.bf16.mxu1 %v3676_v39  ;;  %1375 = vmatmul.mubr.f32.vlgmr.msra.gmra.mrb[0].mxu1 %v3885_v29 }
  0xd7   :  { %2022 = vmatpush1.bf16.msra.mxu1 %v3886_v5  ;;  %1520 = vmatprep.mubr.f32.mxu1 %v3888_v31 }
  0xd8   :  { %2023 = vmatprep.subr.bf16.mxu1 %v3676_v39  ;;  %1809 = vmatpush1.bf16.msra.mxu0 %v3889_v32 }
  0xd9   :  { %1810 = vmatprep.subr.bf16.mxu0 %v3676_v39 }
  0xdb   :  { %2025 = vmatpush1.bf16.msra.mxu1 %v3890_v50 }
  0xdc   :  { %2026 = vmatprep.subr.bf16.mxu1 %v3676_v39  ;;  %1812 = vmatpush1.bf16.msra.mxu0 %v3095_v61  ;;  %v3892_v61 = vand.u32 4294901760, %v3051_v2 }
  0xdd   :  { %1813 = vmatprep.subr.bf16.mxu0 %v3676_v39 }
  0xdf   :  { %2028 = vmatpush1.bf16.msra.mxu1 %v3101_v22  ;;  %v3893_v22 = vld [vmem:[#allocation46_spill] sm:$0xff] }
  0xe0   :  { %2029 = vmatprep.subr.bf16.mxu1 %v3676_v39  ;;  %1815 = vmatpush1.bf16.msra.mxu0 %v3107_v57  ;;  %v3891_v57 = vand.u32 4294901760, %v3046_v6 }
  0xe1   :  { %1816 = vmatprep.subr.bf16.mxu0 %v3676_v39 }
  0xe3   :  { %2031 = vmatpush1.bf16.msra.mxu1 %v3114_v27 }
  0xe4   :  { %2032 = vmatprep.subr.bf16.mxu1 %v3676_v39  ;;  %1818 = vmatpush1.bf16.msra.mxu0 %v3123_v52 }
  0xe5   :  { %1819 = vmatprep.subr.bf16.mxu0 %v3676_v39 }
  0xe7   :  { %2034 = vmatpush1.bf16.msra.mxu1 %v3132_v23 }
  0xe8   :  { %2035 = vmatprep.subr.bf16.mxu1 %v3676_v39  ;;  %1821 = vmatpush1.bf16.msra.mxu0 %v3143_v59 }
  0xe9   :  { %1822 = vmatprep.subr.bf16.mxu0 %v3676_v39 }
  0xeb   :  { %2037 = vmatpush1.bf16.msra.mxu1 %v3149_v53 }
  0xec   :  { %2038 = vmatprep.subr.bf16.mxu1 %v3676_v39  ;;  %1824 = vmatpush1.bf16.msra.mxu0 %v3159_v40 }
  0xed   :  { %1825 = vmatprep.subr.bf16.mxu0 %v3676_v39 }
  0xef   :  { %2040 = vmatpush1.bf16.msra.mxu1 %v3167_v16 }
  0xf0   :  { %2041 = vmatprep.subr.bf16.mxu1 %v3676_v39  ;;  %1827 = vmatpush1.bf16.msra.mxu0 %v3179_v44 }
  0xf1   :  { %1828 = vmatprep.subr.bf16.mxu0 %v3676_v39 }
  0xf3   :  { %2043 = vmatpush1.bf16.msra.mxu1 %v3188_v35 }
  0xf4   :  { %2044 = vmatprep.subr.bf16.mxu1 %v3676_v39  ;;  %1830 = vmatpush1.bf16.msra.mxu0 %v3199_v48 }
  0xf5   :  { %1831 = vmatprep.subr.bf16.mxu0 %v3676_v39 }
  0xf7   :  { %2046 = vmatpush1.bf16.msra.mxu1 %v3208_v17 }
  0xf8   :  { %2047 = vmatprep.subr.bf16.mxu1 %v3676_v39  ;;  %1833 = vmatpush1.bf16.msra.mxu0 %v3217_v0 }
  0xf9   :  { %1834 = vmatprep.subr.bf16.mxu0 %v3676_v39 }
  0xfb   :  { %2049 = vmatpush1.bf16.msra.mxu1 %v3226_v46 }
  0xfc   :  { %2050 = vmatprep.subr.bf16.mxu1 %v3676_v39  ;;  %1836 = vmatpush1.bf16.msra.mxu0 %v3235_v54 }
  0xfd   :  { %1837 = vmatprep.subr.bf16.mxu0 %v3676_v39 }
  0xff   :  { %2052 = vmatpush1.bf16.msra.mxu1 %v3244_v8 }
 0x100   :  { %2053 = vmatprep.subr.bf16.mxu1 %v3676_v39  ;;  %1839 = vmatpush1.bf16.msra.mxu0 %v3253_v14 }
 0x101   :  { %722 = vmatprep.subr.mxu0 %v3810_v13 }
 0x103   :  { %2055 = vmatpush1.bf16.msra.mxu1 %v3262_v19 }
 0x104   :  { %1500 = vmatprep.subr.mxu1 %v3810_v13  ;;  %726 = vmatpush1.msra.mxu0 %v3891_v57 }
 0x105   :  { %1840 = vmatprep.subr.bf16.mxu0 %v3676_v39  ;;  %744 = vmatmul.mubr.f32.vlgmr.msra.gmra.mrb[0].mxu0 %v3817_v33 }
 0x106   :  { %1842 = vmatpush1.bf16.msra.mxu0 %v3850_v41  ;;  %839 = vmatprep.mubr.f32.mxu0 %v3887_v10 }
 0x107   :  { %1504 = vmatpush1.msra.mxu1 %v3892_v61  ;;  %1843 = vmatprep.subr.bf16.mxu0 %v3676_v39 }
 0x108   :  { %2056 = vmatprep.subr.bf16.mxu1 %v3676_v39  ;;  %1522 = vmatmul.mubr.f32.vlgmr.msra.gmra.mrb[0].mxu1 %v3893_v22 }
 0x109   :  { %2058 = vmatpush1.bf16.msra.mxu1 %v3852_v3  ;;  %1617 = vmatprep.mubr.f32.mxu1 %v3888_v31 }
 0x10a   :  { %2059 = vmatprep.subr.bf16.mxu1 %v3676_v39  ;;  %1845 = vmatpush1.bf16.msra.mxu0 %v3855_v58 }
 0x10b   :  { %1846 = vmatprep.subr.bf16.mxu0 %v3676_v39 }
 0x10d   :  { %2061 = vmatpush1.bf16.msra.mxu1 %v3856_v28 }
 0x10e   :  { %2062 = vmatprep.subr.bf16.mxu1 %v3676_v39  ;;  %1848 = vmatpush1.bf16.msra.mxu0 %v3857_v36 }
 0x10f   :  { %1849 = vmatprep.subr.bf16.mxu0 %v3676_v39 }
 0x111   :  { %2064 = vmatpush1.bf16.msra.mxu1 %v3858_v30 }
 0x112   :  { %2065 = vmatprep.subr.bf16.mxu1 %v3676_v39  ;;  %1851 = vmatpush1.bf16.msra.mxu0 %v3859_v51 }
 0x113   :  { %1852 = vmatprep.subr.bf16.mxu0 %v3676_v39 }
 0x115   :  { %2067 = vmatpush1.bf16.msra.mxu1 %v3860_v18 }
 0x116   :  { %2068 = vmatprep.subr.bf16.mxu1 %v3676_v39  ;;  %1854 = vmatpush1.bf16.msra.mxu0 %v3861_v21  ;;  %v1631_v6 = vpop.xlane.xlu0 %1630 }
 0x117   :  { %1855 = vmatprep.subr.bf16.mxu0 %v3676_v39 }
 0x119   :  { %2070 = vmatpush1.bf16.msra.mxu1 %v3862_v63 }
 0x11a   :  { %2071 = vmatprep.subr.bf16.mxu1 %v3676_v39  ;;  %1857 = vmatpush1.bf16.msra.mxu0 %v3863_v25  ;;  %v1636_v2 = vpop.xlane.xlu0 %1635 }
 0x11b   :  { %1858 = vmatprep.subr.bf16.mxu0 %v3676_v39  ;;  %2117 = vrcp.f32 %v1636_v2 }
 0x11c   :  { %2119 = vrcp.f32 %v1631_v6 }
 0x11d   :  { %2073 = vmatpush1.bf16.msra.mxu1 %v3864_v26 }
 0x11e   :  { %2074 = vmatprep.subr.bf16.mxu1 %v3676_v39  ;;  %1860 = vmatpush1.bf16.msra.mxu0 %v3865_v47 }
 0x11f   :  { %1861 = vmatprep.subr.bf16.mxu0 %v3676_v39 }
 0x121   :  { %2076 = vmatpush1.bf16.msra.mxu1 %v3867_v9 }
 0x122   :  { %2077 = vmatprep.subr.bf16.mxu1 %v3676_v39  ;;  %1863 = vmatpush1.bf16.msra.mxu0 %v3871_v38 }
 0x123   :  { %1864 = vmatprep.subr.bf16.mxu0 %v3676_v39 }
 0x125   :  { %2079 = vmatpush1.bf16.msra.mxu1 %v3872_v11 }
 0x126   :  { %2080 = vmatprep.subr.bf16.mxu1 %v3676_v39  ;;  %1866 = vmatpush1.bf16.msra.mxu0 %v3873_v55 }
 0x127   :  { %1867 = vmatprep.subr.bf16.mxu0 %v3676_v39 }
 0x129   :  { %2082 = vmatpush1.bf16.msra.mxu1 %v3874_v15 }
 0x12a   :  { %2083 = vmatprep.subr.bf16.mxu1 %v3676_v39  ;;  %1869 = vmatpush1.bf16.msra.mxu0 %v3875_v56 }
 0x12b   :  { %1870 = vmatprep.subr.bf16.mxu0 %v3676_v39 }
 0x12d   :  { %2085 = vmatpush1.bf16.msra.mxu1 %v3876_v62 }
 0x12e   :  { %2086 = vmatprep.subr.bf16.mxu1 %v3676_v39  ;;  %1872 = vmatpush1.bf16.msra.mxu0 %v3877_v42 }
 0x12f   :  { %1873 = vmatprep.subr.bf16.mxu0 %v3676_v39 }
 0x131   :  { %2088 = vmatpush1.bf16.msra.mxu1 %v3878_v7 }
 0x132   :  { %2089 = vmatprep.subr.bf16.mxu1 %v3676_v39  ;;  %1875 = vmatpush1.bf16.msra.mxu0 %v3879_v49  ;;  %v2118_v39 = vpop.eup %2117 }
 0x133   :  { %821 = vmatprep.subr.mxu0 %v3810_v13  ;;  %v2120_v27 = vpop.eup %2119 }
 0x135   :  { %2091 = vmatpush1.bf16.msra.mxu1 %v3880_v20 }
 0x136   :  { %1599 = vmatprep.subr.mxu1 %v3810_v13  ;;  %823 = vmatpush1.msra.mxu0 %v3881_v43 }
 0x137   :  { %841 = vmatmul.mubr.f32.vlgmr.msra.gmra.mrb[0].mxu0 %v3817_v33 }
 0x139   :  { %1601 = vmatpush1.msra.mxu1 %v3882_v37 }
 0x13a   :  { %1619 = vmatmul.mubr.f32.vlgmr.msra.gmra.mrb[0].mxu1 %v3893_v22 }
 0x20a   :  { %v842_v35 = vpop.f32.mrb[0].mxu0 }
 0x20b   :  { %v1638_v52 = vmul.f32 %v2120_v27, %v842_v35  ;;  %v844_v59 = vpop.f32.mrb[1].mxu0 }
 0x20d   :  { %v1620_v23 = vpop.f32.mrb[0].mxu1  ;;  %1642 = vst.msk [vmem:[#allocation2] sm:$0xf] %vm1641_vm3, %v1638_v52 }
 0x20e   :  { %v1640_v53 = vmul.f32 %v2118_v39, %v1620_v23  ;;  %v1622_v13 = vpop.f32.mrb[1].mxu1 }
 0x210   :  { %1643 = vst.msk [vmem:[#allocation2 + $0x4] sm:$0xf] %vm1641_vm3, %v1640_v53 }
 0x211   :  { %2132 = shalt.err (!%p2129_p4)
}
 0x212   :  { %s2133_s4 = scalar_lea.hbm %s3501_s2, 128 }
 0x213   :  { %p2134_p5 = scmp.ne.s32.totalorder %s3501_s2, %s2133_s4  ;;  %p2137_p6 = scmp.lt.u32.totalorder %s2133_s4, %s3501_s2 }
 0x215   :  { %p2139_p7 = pnand %p2137_p6, %p2134_p5 }
 0x217   :  { %2142 = shalt.err (!%p2139_p7)
}
 0x218   :  { %s2148_s9 = smov 64   ;;  %s2149_s10 = smov 4  }
 0x219   :  { %1655 = dma.vmem_to_hbm [thread:$0]  %s1650_s28, 128, %s3501_s2, [#allocation3], %s2148_s9, %s2148_s9, %s2149_s10  }
 0x21a   :  { %2143 = dma.done.wait [#allocation3], 128  }
 0x21b   :  { %2144 = vsyncadd [#allocation3], 4294967168 }
 0x21c   :  { %1659 = vsyncpa [#allocation3], 1 }

</bundles_post_ra>
